<compile_context>
chip_gen: v5e
topology: v5e:2x2
jax: 0.10.0
libtpu: 0.0.40
codegen_flags: <defaults>
</compile_context>

<pallas_src>
import jax
import jax.numpy as jnp
from jax.experimental import pallas as pl
from jax.experimental.pallas import tpu as pltpu

_MIB = 1024 * 1024


# ---------------------------------------------------------------------------
# Kernel body helpers
# ---------------------------------------------------------------------------
def _weighted_pool(x, mask, w_ref, b_ref):
    # x: (TB, L, H), mask: (TB, L), w: (1, H), b: (1, 1)
    # TODO(synk): offload the per-token score dot-product to the MXU
    # (reshape (TB*L, H) @ (H, 128) weight stack) once the required relayout
    # is verified to lower cleanly; kept on VPU/XLU here for guaranteed compile.
    w = w_ref[...][None]                                   # (1, 1, H)
    scores = jnp.sum(x * w, axis=-1) + b_ref[...]          # (TB, L), L on lanes
    scores = scores + (1.0 - mask) * (-1000000.0)
    m = jnp.max(scores, axis=-1, keepdims=True)            # (TB, 1)
    e = jnp.exp(scores - m)                                 # (TB, L)
    denom = jnp.sum(e, axis=-1, keepdims=True)              # (TB, 1)
    alpha = e * pl.reciprocal(denom, approx=True)           # EUP slot (free-ish)
    # Weighted average of tokens (VPU mul + sublane reduce) -> (TB, H)
    return jnp.sum(x * alpha[:, :, None], axis=1)


def _exit_core(xq, mq, xv, mv,
               wql_ref, bql_ref, wil_ref, bil_ref,
               wqf_ref, bqf_ref, wvf_ref, bvf_ref, wc_ref, bc_ref, out_dtype):
    wq_pooled = _weighted_pool(xq, mq, wql_ref, bql_ref)   # (TB, H)
    wv_pooled = _weighted_pool(xv, mv, wil_ref, bil_ref)   # (TB, H)

    wdt = wqf_ref.dtype  # f32 or bf16 (bf16 operands -> native MXU, f32 acc)

    # q path: linear only (activation computed-but-discarded in the reference;
    # dropout is identity at inference).
    wq = jnp.dot(wq_pooled.astype(wdt), wqf_ref[...],
                 preferred_element_type=jnp.float32) + bqf_ref[...]   # (TB, H)

    # v path: linear -> GELU (tanh approx) -> (dropout = identity)
    wv = jnp.dot(wv_pooled.astype(wdt), wvf_ref[...],
                 preferred_element_type=jnp.float32) + bvf_ref[...]   # (TB, H)
    wv = jax.nn.gelu(wv)

    fv = wq * wv                                                      # (TB, H)
    logits = jnp.dot(fv.astype(wc_ref.dtype), wc_ref[...],
                     preferred_element_type=jnp.float32) + bc_ref[...]  # (TB, E_pad)
    return logits.astype(out_dtype)


def _exit_kernel(q_ref, img_ref, qm_ref, im_ref,
                 wql_ref, bql_ref, wil_ref, bil_ref,
                 wqf_ref, bqf_ref, wvf_ref, bvf_ref,
                 wc_ref, bc_ref, out_ref):
    out_ref[...] = _exit_core(q_ref[...], qm_ref[...], img_ref[...], im_ref[...],
                              wql_ref, bql_ref, wil_ref, bil_ref,
                              wqf_ref, bqf_ref, wvf_ref, bvf_ref,
                              wc_ref, bc_ref, out_ref.dtype)


def _exit_kernel_concat(x_ref, m_ref,
                        wql_ref, bql_ref, wil_ref, bil_ref,
                        wqf_ref, bqf_ref, wvf_ref, bvf_ref,
                        wc_ref, bc_ref, out_ref):
    # use_concat: both pools see the same [q ; img] block -> DMA'd / resident ONCE.
    x = x_ref[...]
    m = m_ref[...]
    out_ref[...] = _exit_core(x, m, x, m,
                              wql_ref, bql_ref, wil_ref, bil_ref,
                              wqf_ref, bqf_ref, wvf_ref, bvf_ref,
                              wc_ref, bc_ref, out_ref.dtype)


# ---------------------------------------------------------------------------
# Wrapper
# ---------------------------------------------------------------------------
def _tpu_vmem_bytes():
    try:
        return int(pltpu.get_tpu_info().vmem_capacity_bytes)
    except Exception:
        return 64 * _MIB   # conservative fallback (v7x per-TC size)


def exit_model_forward(params, q, img, q_mask=None, img_mask=None,
                       use_concat=False, batch_tile=None,
                       matmul_weight_dtype=jnp.float32):
    B, Lq, H = q.shape
    Li = img.shape[1]
    E = params["wc"].shape[1]

    if q_mask is None:
        q_mask = jnp.ones((B, Lq), jnp.float32)
    if img_mask is None:
        img_mask = jnp.ones((B, Li), jnp.float32)
    q_mask = q_mask.astype(jnp.float32)
    img_mask = img_mask.astype(jnp.float32)

    H_pad = pl.cdiv(H, 128) * 128        # full lane occupancy
    E_pad = pl.cdiv(E, 128) * 128        # lane-dense output (no masked vst)

    if use_concat:
        x = jnp.concatenate([q, img], axis=1).astype(jnp.float32)
        xm = jnp.concatenate([q_mask, img_mask], axis=1)
        Lcat = Lq + Li
        act_tokens = Lcat                # tokens DMA'd per batch row
        pool_tokens = 2 * Lcat           # tokens pooled per batch row
    else:
        Lcat = Lq + Li
        act_tokens = Lq + Li
        pool_tokens = Lq + Li

    # ------------------- tile selection from an explicit VMEM budget -------------------
    vmem_bytes = _tpu_vmem_bytes()
    two_cores = vmem_bytes <= 96 * _MIB            # v7x-class: 64 MiB/TC, 2 TCs/chip
    budget = (vmem_bytes * 3) // 4                  # ~96 MiB v5e/v6e, ~48 MiB v7x
    wsize = jnp.dtype(matmul_weight_dtype).itemsize
    # weights are single-buffered (pl.Buffered(1), constant block index)
    w_bytes = ((2 * H_pad * H_pad + H_pad * E_pad) * wsize
               + (4 * H_pad + 2 + E_pad) * 4)
    # per batch row: double-buffered fp32 activation + mask + output blocks
    per_row = 2 * (act_tokens * (H_pad + 1) + E_pad) * 4
    avail = budget - w_bytes - 4 * _MIB             # headroom for internal scratch
    tb_budget = max(8, (int(avail) // per_row // 8) * 8)
    # v6e can fill the 256-row MXU; v7x-class keeps 128 (half the VMEM).
    # (v5e gains nothing past 128 from its 4x128^2 MXU but is not hurt either.)
    tb_cap = 256 if vmem_bytes >= 100 * _MIB else 128

    if batch_tile is None:
        TB = min(tb_budget, tb_cap, ((B + 7) // 8) * 8)
        if two_cores and pl.cdiv(B, TB) == 1 and TB >= 16:
            # split the single tile so both v7x TensorCores get work
            TB = max(8, ((TB // 2 + 7) // 8) * 8)
    else:
        TB = batch_tile
    assert TB % 8 == 0, "batch_tile must be a multiple of 8"
    n_tiles = pl.cdiv(B, TB)
    B_pad = n_tiles * TB

    vmem_limit = int(min(max(budget, w_bytes + TB * per_row + 2 * _MIB),
                         vmem_bytes - 2 * _MIB))
    vmem_limit = max(vmem_limit, 32 * _MIB)

    # ------------------- pad activations (batch to B_pad, hidden to H_pad) -------------------
    def pad_batch(a):
        if B_pad == B:
            return a
        return jnp.pad(a, ((0, B_pad - B),) + ((0, 0),) * (a.ndim - 1))

    def pad_h(a):   # (B, L, H) -> (B, L, H_pad)
        if H_pad == H:
            return a
        return jnp.pad(a, ((0, 0), (0, 0), (0, H_pad - H)))

    if use_concat:
        x = pad_h(pad_batch(x))
        xm = pad_batch(xm)
    else:
        q = pad_h(pad_batch(q.astype(jnp.float32)))
        img = pad_h(pad_batch(img.astype(jnp.float32)))
        q_mask = pad_batch(q_mask)
        img_mask = pad_batch(img_mask)

    # ------------------- pad / cast weights -------------------
    ph, pe = H_pad - H, E_pad - E
    p = {k: jnp.asarray(v, jnp.float32) for k, v in params.items()}
    if ph or pe:
        p["wql"] = jnp.pad(p["wql"], ((0, 0), (0, ph)))
        p["wil"] = jnp.pad(p["wil"], ((0, 0), (0, ph)))
        p["wqf"] = jnp.pad(p["wqf"], ((0, ph), (0, ph)))
        p["wvf"] = jnp.pad(p["wvf"], ((0, ph), (0, ph)))
        p["bqf"] = jnp.pad(p["bqf"], ((0, 0), (0, ph)))
        p["bvf"] = jnp.pad(p["bvf"], ((0, 0), (0, ph)))
        p["wc"] = jnp.pad(p["wc"], ((0, ph), (0, pe)))
        p["bc"] = jnp.pad(p["bc"], ((0, 0), (0, pe)))
    if jnp.dtype(matmul_weight_dtype) != jnp.float32:
        for k in ("wqf", "wvf", "wc"):     # MXU operands only; pooling stays f32
            p[k] = p[k].astype(matmul_weight_dtype)

    # ------------------- specs -------------------
    def wspec(arr):
        # constant block index across the grid -> single-buffer (halves weight VMEM)
        return pl.BlockSpec(arr.shape, lambda b: (0, 0),
                            pipeline_mode=pl.Buffered(1))

    weight_args = (p["wql"], p["bql"], p["wil"], p["bil"],
                   p["wqf"], p["bqf"], p["wvf"], p["bvf"], p["wc"], p["bc"])
    weight_specs = [wspec(a) for a in weight_args]

    if use_concat:
        kernel = _exit_kernel_concat
        in_specs = [pl.BlockSpec((TB, Lcat, H_pad), lambda b: (b, 0, 0)),
                    pl.BlockSpec((TB, Lcat), lambda b: (b, 0))] + weight_specs
        args = (x, xm) + weight_args
    else:
        kernel = _exit_kernel
        in_specs = [pl.BlockSpec((TB, Lq, H_pad), lambda b: (b, 0, 0)),
                    pl.BlockSpec((TB, Li, H_pad), lambda b: (b, 0, 0)),
                    pl.BlockSpec((TB, Lq), lambda b: (b, 0)),
                    pl.BlockSpec((TB, Li), lambda b: (b, 0))] + weight_specs
        args = (q, img, q_mask, img_mask) + weight_args

    grid_spec = pltpu.PrefetchScalarGridSpec(
        num_scalar_prefetch=0,
        grid=(n_tiles,),
        in_specs=in_specs,
        out_specs=pl.BlockSpec((TB, E_pad), lambda b: (b, 0)),
    )

    flops = B_pad * (4 * pool_tokens * H_pad + 4 * H_pad * H_pad + 2 * H_pad * E_pad)
    transcendentals = B_pad * (pool_tokens + H_pad)
    bytes_accessed = (B_pad * act_tokens * (H_pad + 1) * 4
                      + B_pad * E_pad * 4 + w_bytes)
    cost = pl.CostEstimate(flops=int(flops),
                           transcendentals=int(transcendentals),
                           bytes_accessed=int(bytes_accessed))

    out = pl.pallas_call(
        kernel,
        out_shape=jax.ShapeDtypeStruct((B_pad, E_pad), jnp.float32),
        grid_spec=grid_spec,
        compiler_params=pltpu.CompilerParams(
            dimension_semantics=("parallel",),
            vmem_limit_bytes=vmem_limit),
        cost_estimate=cost,
    )(*args)
    return out[:B, :E]   # exit_scores: (B, num_exit_layers)


def bce_with_logits_loss(logits, labels, pos_weight=0.2):
    # Plain-JAX glue matching nn.BCEWithLogitsLoss(pos_weight=0.2), mean reduction.
    log_p = jax.nn.log_sigmoid(logits)
    log_not_p = jax.nn.log_sigmoid(-logits)
    loss = -(pos_weight * labels * log_p + (1.0 - labels) * log_not_p)
    return jnp.mean(loss)


# ---------------------------------------------------------------------------
# Pure-JAX reference (for a silent correctness check)
# ---------------------------------------------------------------------------
def _reference_forward(params, q, img, q_mask, img_mask):
    def pool(x, mask, w, b):
        scores = jnp.einsum("blh,h->bl", x, w[0]) + b[0, 0]
        scores = scores + (1.0 - mask) * (-1000000.0)
        alpha = jax.nn.softmax(scores, axis=-1)
        return jnp.einsum("bl,blh->bh", alpha, x)

    wq = pool(q, q_mask, params["wql"], params["bql"])
    wv = pool(img, img_mask, params["wil"], params["bil"])
    wq = wq @ params["wqf"] + params["bqf"]
    wv = jax.nn.gelu(wv @ params["wvf"] + params["bvf"])
    fv = wq * wv
    return fv @ params["wc"] + params["bc"]


def init_params(key, h_dim, num_exit_layers):
    ks = jax.random.split(key, 10)
    s = 0.05
    f32 = jnp.float32
    return {
        # score weights stored as (1, H) rows; FFN/classifier as (in, out)
        "wql": s * jax.random.normal(ks[0], (1, h_dim), f32),
        "bql": s * jax.random.normal(ks[1], (1, 1), f32),
        "wil": s * jax.random.normal(ks[2], (1, h_dim), f32),
        "bil": s * jax.random.normal(ks[3], (1, 1), f32),
        "wqf": s * jax.random.normal(ks[4], (h_dim, h_dim), f32),
        "bqf": s * jax.random.normal(ks[5], (1, h_dim), f32),
        "wvf": s * jax.random.normal(ks[6], (h_dim, h_dim), f32),
        "bvf": s * jax.random.normal(ks[7], (1, h_dim), f32),
        "wc": s * jax.random.normal(ks[8], (h_dim, num_exit_layers), f32),
        "bc": s * jax.random.normal(ks[9], (1, num_exit_layers), f32),
    }


if __name__ == "__main__":
    B, Lq, Li, H, E = 2, 8, 8, 32, 4   # batch, q-len, img-len, hidden, num_exit_layers

    key = jax.random.PRNGKey(0)
    k_q, k_img, k_lbl, k_par = jax.random.split(key, 4)

    q = jax.random.normal(k_q, (B, Lq, H), jnp.float32)
    img = jax.random.normal(k_img, (B, Li, H), jnp.float32)
    # mask == 1.0 -> position is scored; mask == 0.0 -> -1e6 penalty (as in the code)
    q_mask = jnp.ones((B, Lq), jnp.float32).at[:, -2:].set(0.0)
    img_mask = jnp.ones((B, Li), jnp.float32).at[:, -1:].set(0.0)
    labels = (jax.random.uniform(k_lbl, (B, E)) > 0.5).astype(jnp.float32)

    params = init_params(k_par, H, E)

    # --- separate-pool path (f32 weights)
    exit_scores = exit_model_forward(params, q, img, q_mask, img_mask,
                                     use_concat=False)
    exit_scores = jax.block_until_ready(exit_scores)
    ref = _reference_forward(params, q, img, q_mask, img_mask)
    assert exit_scores.shape == (B, E)
    # slightly loose tolerance: softmax uses pl.reciprocal(approx=True)
    assert jnp.allclose(exit_scores, ref, atol=2e-3, rtol=2e-3)

    # --- use_concat path (single shared [q;img] block, DMA'd once)
    out_cat = jax.block_until_ready(
        exit_model_forward(params, q, img, q_mask, img_mask, use_concat=True))
    qi = jnp.concatenate([q, img], axis=1)
    qim = jnp.concatenate([q_mask, img_mask], axis=1)
    ref_cat = _reference_forward(params, qi, qi, qim, qim)
    assert jnp.allclose(out_cat, ref_cat, atol=2e-3, rtol=2e-3)

    # --- bf16 matmul-weight variant (VMEM / MXU win on v6e, v7x); loose tolerance
    out_bf16 = jax.block_until_ready(
        exit_model_forward(params, q, img, q_mask, img_mask,
                           matmul_weight_dtype=jnp.bfloat16))
    assert jnp.allclose(out_bf16, ref, atol=5e-2, rtol=5e-2)

    # optional loss (glue, matches nn.BCEWithLogitsLoss(pos_weight=0.2))
    ee_loss = jax.block_until_ready(bce_with_logits_loss(exit_scores, labels))
    assert jnp.isfinite(ee_loss)

    print("KERNEL_OK")
</pallas_src>

<mosaic_0001>
module attributes {stable_mosaic.version = 11 : i64} {
  func.func @_exit_kernel(%arg0: i32, %arg1: memref<8x8x128xf32, #tpu.memory_space<vmem>>, %arg2: memref<8x8x128xf32, #tpu.memory_space<vmem>>, %arg3: memref<8x8xf32, #tpu.memory_space<vmem>>, %arg4: memref<8x8xf32, #tpu.memory_space<vmem>>, %arg5: memref<1x128xf32, #tpu.memory_space<vmem>>, %arg6: memref<1x1xf32, #tpu.memory_space<vmem>>, %arg7: memref<1x128xf32, #tpu.memory_space<vmem>>, %arg8: memref<1x1xf32, #tpu.memory_space<vmem>>, %arg9: memref<128x128xf32, #tpu.memory_space<vmem>>, %arg10: memref<1x128xf32, #tpu.memory_space<vmem>>, %arg11: memref<128x128xf32, #tpu.memory_space<vmem>>, %arg12: memref<1x128xf32, #tpu.memory_space<vmem>>, %arg13: memref<128x128xf32, #tpu.memory_space<vmem>>, %arg14: memref<1x128xf32, #tpu.memory_space<vmem>>, %arg15: memref<8x128xf32, #tpu.memory_space<vmem>>) attributes {dimension_semantics = [#tpu.dimension_semantics<parallel>], iteration_bounds = array<i64: 1>, scalar_prefetch = 0 : i64, scratch_operands = 0 : i64, tpu.core_type = #tpu.core_type<tc>, window_params = [{transform_indices = @transform_0, window_bounds = array<i64: 8, 8, 128>}, {transform_indices = @transform_1, window_bounds = array<i64: 8, 8, 128>}, {transform_indices = @transform_2, window_bounds = array<i64: 8, 8>}, {transform_indices = @transform_3, window_bounds = array<i64: 8, 8>}, {pipeline_mode = #tpu.pipeline_mode<synchronous>, transform_indices = @transform_4, window_bounds = array<i64: 1, 128>}, {pipeline_mode = #tpu.pipeline_mode<synchronous>, transform_indices = @transform_5, window_bounds = array<i64: 1, 1>}, {pipeline_mode = #tpu.pipeline_mode<synchronous>, transform_indices = @transform_6, window_bounds = array<i64: 1, 128>}, {pipeline_mode = #tpu.pipeline_mode<synchronous>, transform_indices = @transform_7, window_bounds = array<i64: 1, 1>}, {pipeline_mode = #tpu.pipeline_mode<synchronous>, transform_indices = @transform_8, window_bounds = array<i64: 128, 128>}, {pipeline_mode = #tpu.pipeline_mode<synchronous>, transform_indices = @transform_9, window_bounds = array<i64: 1, 128>}, {pipeline_mode = #tpu.pipeline_mode<synchronous>, transform_indices = @transform_10, window_bounds = array<i64: 128, 128>}, {pipeline_mode = #tpu.pipeline_mode<synchronous>, transform_indices = @transform_11, window_bounds = array<i64: 1, 128>}, {pipeline_mode = #tpu.pipeline_mode<synchronous>, transform_indices = @transform_12, window_bounds = array<i64: 128, 128>}, {pipeline_mode = #tpu.pipeline_mode<synchronous>, transform_indices = @transform_13, window_bounds = array<i64: 1, 128>}, {transform_indices = @transform_14, window_bounds = array<i64: 8, 128>}]} {
    %c0 = arith.constant 0 : index
    %c0_0 = arith.constant 0 : index
    %c0_1 = arith.constant 0 : index
    %0 = vector.load %arg1[%c0, %c0_0, %c0_1] : memref<8x8x128xf32, #tpu.memory_space<vmem>>, vector<8x8x128xf32>
    %c0_2 = arith.constant 0 : index
    %c0_3 = arith.constant 0 : index
    %1 = vector.load %arg3[%c0_2, %c0_3] : memref<8x8xf32, #tpu.memory_space<vmem>>, vector<8x8xf32>
    %c0_4 = arith.constant 0 : index
    %c0_5 = arith.constant 0 : index
    %c0_6 = arith.constant 0 : index
    %2 = vector.load %arg2[%c0_4, %c0_5, %c0_6] : memref<8x8x128xf32, #tpu.memory_space<vmem>>, vector<8x8x128xf32>
    %c0_7 = arith.constant 0 : index
    %c0_8 = arith.constant 0 : index
    %3 = vector.load %arg4[%c0_7, %c0_8] : memref<8x8xf32, #tpu.memory_space<vmem>>, vector<8x8xf32>
    %c0_9 = arith.constant 0 : index
    %c0_10 = arith.constant 0 : index
    %4 = vector.load %arg5[%c0_9, %c0_10] : memref<1x128xf32, #tpu.memory_space<vmem>>, vector<1x128xf32>
    %5 = vector.shape_cast %4 : vector<1x128xf32> to vector<1x1x128xf32>
    %6 = vector.broadcast %5 : vector<1x1x128xf32> to vector<8x8x128xf32>
    %7 = arith.mulf %0, %6 : vector<8x8x128xf32>
    %cst = arith.constant dense<0.000000e+00> : vector<8x8xf32>
    %8 = vector.multi_reduction <add>, %7, %cst [2] : vector<8x8x128xf32> to vector<8x8xf32>
    %c0_11 = arith.constant 0 : index
    %c0_12 = arith.constant 0 : index
    %9 = vector.load %arg6[%c0_11, %c0_12] : memref<1x1xf32, #tpu.memory_space<vmem>>, vector<1x1xf32>
    %10 = vector.broadcast %9 : vector<1x1xf32> to vector<8x8xf32>
    %11 = arith.addf %8, %10 : vector<8x8xf32>
    %cst_13 = arith.constant 1.000000e+00 : f32
    %12 = vector.broadcast %cst_13 : f32 to vector<8x8xf32>
    %13 = arith.subf %12, %1 : vector<8x8xf32>
    %cst_14 = arith.constant -1.000000e+06 : f32
    %14 = vector.broadcast %cst_14 : f32 to vector<8x8xf32>
    %15 = arith.mulf %13, %14 : vector<8x8xf32>
    %16 = arith.addf %11, %15 : vector<8x8xf32>
    %cst_15 = arith.constant dense<0xFF800000> : vector<8xf32>
    %17 = vector.multi_reduction <maximumf>, %16, %cst_15 [1] : vector<8x8xf32> to vector<8xf32>
    %18 = vector.shape_cast %17 : vector<8xf32> to vector<8x1xf32>
    %19 = vector.broadcast %18 : vector<8x1xf32> to vector<8x8xf32>
    %20 = arith.subf %16, %19 : vector<8x8xf32>
    %21 = math.exp %20 : vector<8x8xf32>
    %cst_16 = arith.constant dense<0.000000e+00> : vector<8xf32>
    %22 = vector.multi_reduction <add>, %21, %cst_16 [1] : vector<8x8xf32> to vector<8xf32>
    %23 = vector.shape_cast %22 : vector<8xf32> to vector<8x1xf32>
    %24 = tpu.reciprocal %23 {approx = true} : vector<8x1xf32> -> vector<8x1xf32>
    %25 = vector.broadcast %24 : vector<8x1xf32> to vector<8x8xf32>
    %26 = arith.mulf %21, %25 : vector<8x8xf32>
    %27 = vector.shape_cast %26 : vector<8x8xf32> to vector<8x8x1xf32>
    %28 = vector.broadcast %27 : vector<8x8x1xf32> to vector<8x8x128xf32>
    %29 = arith.mulf %0, %28 : vector<8x8x128xf32>
    %cst_17 = arith.constant dense<0.000000e+00> : vector<8x128xf32>
    %30 = vector.multi_reduction <add>, %29, %cst_17 [1] : vector<8x8x128xf32> to vector<8x128xf32>
    %c0_18 = arith.constant 0 : index
    %c0_19 = arith.constant 0 : index
    %31 = vector.load %arg7[%c0_18, %c0_19] : memref<1x128xf32, #tpu.memory_space<vmem>>, vector<1x128xf32>
    %32 = vector.shape_cast %31 : vector<1x128xf32> to vector<1x1x128xf32>
    %33 = vector.broadcast %32 : vector<1x1x128xf32> to vector<8x8x128xf32>
    %34 = arith.mulf %2, %33 : vector<8x8x128xf32>
    %cst_20 = arith.constant dense<0.000000e+00> : vector<8x8xf32>
    %35 = vector.multi_reduction <add>, %34, %cst_20 [2] : vector<8x8x128xf32> to vector<8x8xf32>
    %c0_21 = arith.constant 0 : index
    %c0_22 = arith.constant 0 : index
    %36 = vector.load %arg8[%c0_21, %c0_22] : memref<1x1xf32, #tpu.memory_space<vmem>>, vector<1x1xf32>
    %37 = vector.broadcast %36 : vector<1x1xf32> to vector<8x8xf32>
    %38 = arith.addf %35, %37 : vector<8x8xf32>
    %cst_23 = arith.constant 1.000000e+00 : f32
    %39 = vector.broadcast %cst_23 : f32 to vector<8x8xf32>
    %40 = arith.subf %39, %3 : vector<8x8xf32>
    %cst_24 = arith.constant -1.000000e+06 : f32
    %41 = vector.broadcast %cst_24 : f32 to vector<8x8xf32>
    %42 = arith.mulf %40, %41 : vector<8x8xf32>
    %43 = arith.addf %38, %42 : vector<8x8xf32>
    %cst_25 = arith.constant dense<0xFF800000> : vector<8xf32>
    %44 = vector.multi_reduction <maximumf>, %43, %cst_25 [1] : vector<8x8xf32> to vector<8xf32>
    %45 = vector.shape_cast %44 : vector<8xf32> to vector<8x1xf32>
    %46 = vector.broadcast %45 : vector<8x1xf32> to vector<8x8xf32>
    %47 = arith.subf %43, %46 : vector<8x8xf32>
    %48 = math.exp %47 : vector<8x8xf32>
    %cst_26 = arith.constant dense<0.000000e+00> : vector<8xf32>
    %49 = vector.multi_reduction <add>, %48, %cst_26 [1] : vector<8x8xf32> to vector<8xf32>
    %50 = vector.shape_cast %49 : vector<8xf32> to vector<8x1xf32>
    %51 = tpu.reciprocal %50 {approx = true} : vector<8x1xf32> -> vector<8x1xf32>
    %52 = vector.broadcast %51 : vector<8x1xf32> to vector<8x8xf32>
    %53 = arith.mulf %48, %52 : vector<8x8xf32>
    %54 = vector.shape_cast %53 : vector<8x8xf32> to vector<8x8x1xf32>
    %55 = vector.broadcast %54 : vector<8x8x1xf32> to vector<8x8x128xf32>
    %56 = arith.mulf %2, %55 : vector<8x8x128xf32>
    %cst_27 = arith.constant dense<0.000000e+00> : vector<8x128xf32>
    %57 = vector.multi_reduction <add>, %56, %cst_27 [1] : vector<8x8x128xf32> to vector<8x128xf32>
    %c0_28 = arith.constant 0 : index
    %c0_29 = arith.constant 0 : index
    %58 = vector.load %arg9[%c0_28, %c0_29] : memref<128x128xf32, #tpu.memory_space<vmem>>, vector<128x128xf32>
    %cst_30 = arith.constant dense<0.000000e+00> : vector<8x128xf32>
    %59 = tpu.matmul %30, %58, %cst_30 {dimension_numbers = #tpu.dot_dimension_numbers<[1], [0], [0], [1], [0, 0, 1, 1], [], []>} : vector<8x128xf32>, vector<128x128xf32>, vector<8x128xf32> -> vector<8x128xf32>
    %c0_31 = arith.constant 0 : index
    %c0_32 = arith.constant 0 : index
    %60 = vector.load %arg10[%c0_31, %c0_32] : memref<1x128xf32, #tpu.memory_space<vmem>>, vector<1x128xf32>
    %61 = vector.broadcast %60 : vector<1x128xf32> to vector<8x128xf32>
    %62 = arith.addf %59, %61 : vector<8x128xf32>
    %c0_33 = arith.constant 0 : index
    %c0_34 = arith.constant 0 : index
    %63 = vector.load %arg11[%c0_33, %c0_34] : memref<128x128xf32, #tpu.memory_space<vmem>>, vector<128x128xf32>
    %cst_35 = arith.constant dense<0.000000e+00> : vector<8x128xf32>
    %64 = tpu.matmul %57, %63, %cst_35 {dimension_numbers = #tpu.dot_dimension_numbers<[1], [0], [0], [1], [0, 0, 1, 1], [], []>} : vector<8x128xf32>, vector<128x128xf32>, vector<8x128xf32> -> vector<8x128xf32>
    %c0_36 = arith.constant 0 : index
    %c0_37 = arith.constant 0 : index
    %65 = vector.load %arg12[%c0_36, %c0_37] : memref<1x128xf32, #tpu.memory_space<vmem>>, vector<1x128xf32>
    %66 = vector.broadcast %65 : vector<1x128xf32> to vector<8x128xf32>
    %67 = arith.addf %64, %66 : vector<8x128xf32>
    %68 = arith.mulf %67, %67 : vector<8x128xf32>
    %69 = arith.mulf %67, %68 : vector<8x128xf32>
    %cst_38 = arith.constant 4.471500e-02 : f32
    %70 = vector.broadcast %cst_38 : f32 to vector<8x128xf32>
    %71 = arith.mulf %70, %69 : vector<8x128xf32>
    %72 = arith.addf %67, %71 : vector<8x128xf32>
    %cst_39 = arith.constant 0.797884583 : f32
    %73 = vector.broadcast %cst_39 : f32 to vector<8x128xf32>
    %74 = arith.mulf %73, %72 : vector<8x128xf32>
    %75 = math.tanh %74 : vector<8x128xf32>
    %cst_40 = arith.constant 1.000000e+00 : f32
    %76 = vector.broadcast %cst_40 : f32 to vector<8x128xf32>
    %77 = arith.addf %76, %75 : vector<8x128xf32>
    %cst_41 = arith.constant 5.000000e-01 : f32
    %78 = vector.broadcast %cst_41 : f32 to vector<8x128xf32>
    %79 = arith.mulf %78, %77 : vector<8x128xf32>
    %80 = arith.mulf %67, %79 : vector<8x128xf32>
    %81 = arith.mulf %62, %80 : vector<8x128xf32>
    %c0_42 = arith.constant 0 : index
    %c0_43 = arith.constant 0 : index
    %82 = vector.load %arg13[%c0_42, %c0_43] : memref<128x128xf32, #tpu.memory_space<vmem>>, vector<128x128xf32>
    %cst_44 = arith.constant dense<0.000000e+00> : vector<8x128xf32>
    %83 = tpu.matmul %81, %82, %cst_44 {dimension_numbers = #tpu.dot_dimension_numbers<[1], [0], [0], [1], [0, 0, 1, 1], [], []>} : vector<8x128xf32>, vector<128x128xf32>, vector<8x128xf32> -> vector<8x128xf32>
    %c0_45 = arith.constant 0 : index
    %c0_46 = arith.constant 0 : index
    %84 = vector.load %arg14[%c0_45, %c0_46] : memref<1x128xf32, #tpu.memory_space<vmem>>, vector<1x128xf32>
    %85 = vector.broadcast %84 : vector<1x128xf32> to vector<8x128xf32>
    %86 = arith.addf %83, %85 : vector<8x128xf32>
    %c0_47 = arith.constant 0 : index
    %c0_48 = arith.constant 0 : index
    %87 = vector.load %arg15[%c0_47, %c0_48] : memref<8x128xf32, #tpu.memory_space<vmem>>, vector<8x128xf32>
    tpu.vector_store %arg15[%c0_47, %c0_48], %86 {strides = array<i32>} : memref<8x128xf32, #tpu.memory_space<vmem>>, vector<8x128xf32>,
    return
  }
  func.func @transform_0(%arg0: i32) -> (i32, i32, i32) {
    %c0_i32 = arith.constant 0 : i32
    %c0_i32_0 = arith.constant 0 : i32
    %c0_i32_1 = arith.constant 0 : i32
    return %arg0, %c0_i32, %c0_i32_0 : i32, i32, i32
  }
  func.func @transform_1(%arg0: i32) -> (i32, i32, i32) {
    %c0_i32 = arith.constant 0 : i32
    %c0_i32_0 = arith.constant 0 : i32
    %c0_i32_1 = arith.constant 0 : i32
    return %arg0, %c0_i32, %c0_i32_0 : i32, i32, i32
  }
  func.func @transform_2(%arg0: i32) -> (i32, i32) {
    %c0_i32 = arith.constant 0 : i32
    %c0_i32_0 = arith.constant 0 : i32
    return %arg0, %c0_i32 : i32, i32
  }
  func.func @transform_3(%arg0: i32) -> (i32, i32) {
    %c0_i32 = arith.constant 0 : i32
    %c0_i32_0 = arith.constant 0 : i32
    return %arg0, %c0_i32 : i32, i32
  }
  func.func @transform_4(%arg0: i32) -> (i32, i32) {
    %c0_i32 = arith.constant 0 : i32
    %c0_i32_0 = arith.constant 0 : i32
    %c0_i32_1 = arith.constant 0 : i32
    return %c0_i32, %c0_i32_0 : i32, i32
  }
  func.func @transform_5(%arg0: i32) -> (i32, i32) {
    %c0_i32 = arith.constant 0 : i32
    %c0_i32_0 = arith.constant 0 : i32
    %c0_i32_1 = arith.constant 0 : i32
    return %c0_i32, %c0_i32_0 : i32, i32
  }
  func.func @transform_6(%arg0: i32) -> (i32, i32) {
    %c0_i32 = arith.constant 0 : i32
    %c0_i32_0 = arith.constant 0 : i32
    %c0_i32_1 = arith.constant 0 : i32
    return %c0_i32, %c0_i32_0 : i32, i32
  }
  func.func @transform_7(%arg0: i32) -> (i32, i32) {
    %c0_i32 = arith.constant 0 : i32
    %c0_i32_0 = arith.constant 0 : i32
    %c0_i32_1 = arith.constant 0 : i32
    return %c0_i32, %c0_i32_0 : i32, i32
  }
  func.func @transform_8(%arg0: i32) -> (i32, i32) {
    %c0_i32 = arith.constant 0 : i32
    %c0_i32_0 = arith.constant 0 : i32
    %c0_i32_1 = arith.constant 0 : i32
    return %c0_i32, %c0_i32_0 : i32, i32
  }
  func.func @transform_9(%arg0: i32) -> (i32, i32) {
    %c0_i32 = arith.constant 0 : i32
    %c0_i32_0 = arith.constant 0 : i32
    %c0_i32_1 = arith.constant 0 : i32
    return %c0_i32, %c0_i32_0 : i32, i32
  }
  func.func @transform_10(%arg0: i32) -> (i32, i32) {
    %c0_i32 = arith.constant 0 : i32
    %c0_i32_0 = arith.constant 0 : i32
    %c0_i32_1 = arith.constant 0 : i32
    return %c0_i32, %c0_i32_0 : i32, i32
  }
  func.func @transform_11(%arg0: i32) -> (i32, i32) {
    %c0_i32 = arith.constant 0 : i32
    %c0_i32_0 = arith.constant 0 : i32
    %c0_i32_1 = arith.constant 0 : i32
    return %c0_i32, %c0_i32_0 : i32, i32
  }
  func.func @transform_12(%arg0: i32) -> (i32, i32) {
    %c0_i32 = arith.constant 0 : i32
    %c0_i32_0 = arith.constant 0 : i32
    %c0_i32_1 = arith.constant 0 : i32
    return %c0_i32, %c0_i32_0 : i32, i32
  }
  func.func @transform_13(%arg0: i32) -> (i32, i32) {
    %c0_i32 = arith.constant 0 : i32
    %c0_i32_0 = arith.constant 0 : i32
    %c0_i32_1 = arith.constant 0 : i32
    return %c0_i32, %c0_i32_0 : i32, i32
  }
  func.func @transform_14(%arg0: i32) -> (i32, i32) {
    %c0_i32 = arith.constant 0 : i32
    %c0_i32_0 = arith.constant 0 : i32
    return %arg0, %c0_i32 : i32, i32
  }
}

</mosaic_0001>

<bundles_post_ra>
// kernel: tpu_custom_call.1
= control target key start
LH: loop header
LB: loop body
LE: loop exit
PB: predicated region body
PF: predicated region fallthrough
CT: control target
= control target key end

     0   :  { %s1835_s0 = inlined_call_operand.hbm [shape: f32[8,8,128], index: 0, kind: input, shape index: {}]   ;;  %s1836_s1 = inlined_call_operand.hbm [shape: f32[8,8,128], index: 1, kind: input, shape index: {}]   ;;  %s1837_s2 = inlined_call_operand.hbm [shape: f32[8,8], index: 2, kind: input, shape index: {}]   ;;  %s1838_s3 = inlined_call_operand.hbm [shape: f32[8,8], index: 3, kind: input, shape index: {}]   ;;  %s1839_s4 = inlined_call_operand.vmem [shape: f32[1,128], index: 4, kind: input, shape index: {}]   ;;  %s1840_s5 = inlined_call_operand.<no memory space> [shape: f32[1,1], index: 5, kind: input, shape index: {}]   ;;  %s1841_s6 = inlined_call_operand.vmem [shape: f32[1,128], index: 6, kind: input, shape index: {}]   ;;  %s1842_s8 = inlined_call_operand.hbm [shape: f32[128,128], index: 8, kind: input, shape index: {}]   ;;  %s1843_s9 = inlined_call_operand.vmem [shape: f32[1,128], index: 9, kind: input, shape index: {}]   ;;  %s1844_s10 = inlined_call_operand.hbm [shape: f32[128,128], index: 10, kind: input, shape index: {}]   ;;  %s1845_s11 = inlined_call_operand.vmem [shape: f32[1,128], index: 11, kind: input, shape index: {}]   ;;  %s1846_s12 = inlined_call_operand.hbm [shape: f32[128,128], index: 12, kind: input, shape index: {}]   ;;  %s1847_s13 = inlined_call_operand.vmem [shape: f32[1,128], index: 13, kind: input, shape index: {}]   ;;  %s1848_s14 = inlined_call_operand.hbm [shape: f32[8,128], index: 14, kind: output, shape index: {}]   ;;  %s1849_s7 = inlined_call_operand.<no memory space> [shape: f32[1,1], index: 7, kind: input, shape index: {}]  }
   0x1   :  { %v19_v0 = vstv %s1840_s5  ;;  %v21_v1 = vstv %s1849_s7 }
   0x2   :  { %20 = vst [vmem:[#allocation2] sm:$0x1] %v19_v0 }
   0x3   :  { %22 = vst [vmem:[#allocation3] sm:$0x1] %v21_v1 }
   0x4   :  { %23 = vsyncpa [#allocation5], 0 }
   0x5   :  { %24 = vsyncpa [#allocation8], 0 }
   0x6   :  { %25 = vsyncpa [#allocation11], 0 }
   0x7   :  { %26 = vsyncpa [#allocation14], 0 }
   0x8   :  { %27 = vsyncpa [#allocation6], 0  ;;  %s45_s19 = sshll.u32 %s1836_s1, 4  ;;  %s1406_s20 = smov [#allocation7]   ;;  %s46_s19 = int_to_ptr.hbm [resolvable:$true] %s45_s19 }
   0x9   :  { %s47_s21 = sshll.u32 %s1406_s20, 4  ;;  %s70_s23 = sshll.u32 %s1838_s3, 4  ;;  %s48_s21 = int_to_ptr.vmem [resolvable:$true] %s47_s21  ;;  %s71_s23 = int_to_ptr.hbm [resolvable:$true] %s70_s23 }
   0xa   :  { %s1407_s7 = smov 128   ;;  %s1408_s24 = smov 8  }
   0xb   :  { %53 = dma.hbm_to_vmem [thread:$0]  %s46_s19, 1024, %s48_s21, [#allocation8], %s1407_s7, %s1407_s7, %s1408_s24  }
   0xc   :  { %s1409_s25 = smov [#allocation10]   ;;  %s103_s1 = sshll.u32 %s1844_s10, 4  ;;  %s104_s1 = int_to_ptr.hbm [resolvable:$true] %s103_s1 }
   0xd   :  { %s72_s26 = sshll.u32 %s1409_s25, 4  ;;  %s32_s3 = sshll.u32 %s1835_s0, 4  ;;  %s73_s26 = int_to_ptr.vmem [resolvable:$true] %s72_s26  ;;  %s33_s3 = int_to_ptr.hbm [resolvable:$true] %s32_s3 }
   0xe   :  { %75 = dma.hbm_to_vmem [thread:$0]  %s71_s23, 128, %s73_s26, [#allocation11]  }
   0xf   :  { %s1410_s15 = smov [#allocation13]   ;;  %s1411_s17 = smov [#allocation4]  }
  0x10   :  { %s105_s16 = sshll.u32 %s1410_s15, 4  ;;  %s34_s18 = sshll.u32 %s1411_s17, 4  ;;  %s106_s16 = int_to_ptr.vmem [resolvable:$true] %s105_s16  ;;  %s35_s18 = int_to_ptr.vmem [resolvable:$true] %s34_s18 }
  0x11   :  { %111 = dma.hbm_to_vmem [thread:$0]  %s104_s1, 2048, %s106_s16, [#allocation14], %s1407_s7, %s1407_s7, %s1408_s24  }
  0x12   :  { %s59_s10 = sshll.u32 %s1837_s2, 4  ;;  %s88_s5 = sshll.u32 %s1842_s8, 4  ;;  %s60_s10 = int_to_ptr.hbm [resolvable:$true] %s59_s10  ;;  %s89_s5 = int_to_ptr.hbm [resolvable:$true] %s88_s5 }
  0x13   :  { %40 = dma.hbm_to_vmem [thread:$0]  %s33_s3, 1024, %s35_s18, [#allocation5], %s1407_s7, %s1407_s7, %s1408_s24  }
  0x14   :  { %s1412_s22 = smov [#allocation9]   ;;  %s1413_s25 = smov [#allocation12]  }
  0x15   :  { %s61_s23 = sshll.u32 %s1412_s22, 4  ;;  %s90_s26 = sshll.u32 %s1413_s25, 4  ;;  %s62_s23 = int_to_ptr.vmem [resolvable:$true] %s61_s23  ;;  %s91_s26 = int_to_ptr.vmem [resolvable:$true] %s90_s26 }
  0x16   :  { %64 = dma.hbm_to_vmem [thread:$0]  %s60_s10, 128, %s62_s23, [#allocation8]  }
  0x17   :  { %s118_s2 = sshll.u32 %s1846_s12, 4  ;;  %s1414_s1 = smov [#allocation15]   ;;  %s119_s2 = int_to_ptr.hbm [resolvable:$true] %s118_s2 }
  0x18   :  { %96 = dma.hbm_to_vmem [thread:$0]  %s89_s5, 2048, %s91_s26, [#allocation11], %s1407_s7, %s1407_s7, %s1408_s24  }
  0x19   :  { %s120_s29 = sshll.u32 %s1414_s1, 4  ;;  %s121_s29 = int_to_ptr.vmem [resolvable:$true] %s120_s29 }
  0x1a   :  { %126 = dma.hbm_to_vmem [thread:$0]  %s119_s2, 2048, %s121_s29, [#allocation14], %s1407_s7, %s1407_s7, %s1408_s24  }
  0x1b   :  { %1396 = dma.done.wait [#allocation5], 1024  }
  0x1c   :  { %1397 = vsyncadd [#allocation5], 4294966272 }
  0x1d   :  { %1398 = dma.done.wait [#allocation8], 1152  }
  0x1e   :  { %1399 = vsyncadd [#allocation8], 4294966144 }
  0x1f   :  { %1400 = dma.done.wait [#allocation11], 2176  }
  0x20   :  { %1401 = vsyncadd [#allocation11], 4294965120 }
  0x21   :  { %1402 = dma.done.wait [#allocation14], 4096  }
  0x22   :  { %1403 = vsyncadd [#allocation14], 4294963200  ;;  %v222_v2 = vlaneseq  ;;  %v1535_v4 = vld [vmem:[#allocation7 + $0x18] sm:$0xff]  ;;  %v1540_v6 = vld [vmem:[#allocation7 + $0x10] sm:$0xff]  ;;  %v1415_v14 = vmov 0   ;;  %vm335_vm0 = vcmask 1041409  }
  0x23   :  { %v1152_v5 = vld [vmem:[%s1841_s6] ss:$0 sm:$0xff]  ;;  %v1542_v7 = vld [vmem:[#allocation7] sm:$0xff]  ;;  %v1549_v12 = vld [vmem:[#allocation7 + $0x28] sm:$0xff]  ;;  %1146 = vset.pattern.permute.xlu1 %v1415_v14  ;;  %vm337_vm1 = vcmask 1042434   ;;  %vm339_vm2 = vcmask 1043459  }
  0x24   :  { %v223_v3 = vshrl.u32 %v222_v2, 7  ;;  %v575_v8 = vmul.f32 %v1152_v5, %v1535_v4  ;;  %v574_v9 = vmul.f32 %v1152_v5, %v1540_v6  ;;  %v572_v10 = vmul.f32 %v1152_v5, %v1542_v7  ;;  %v1547_v11 = vld [vmem:[#allocation7 + $0x20] sm:$0xff]  ;;  %v1551_v13 = vld [vmem:[#allocation7 + $0x8] sm:$0xff]  ;;  %v1560_v18 = vld [vmem:[%s1839_s4] ss:$0 sm:$0xff]  ;;  %s1416_s16 = smov [#allocation16]  }
  0x25   :  { %v576_v15 = vmul.f32 %v1152_v5, %v1547_v11  ;;  %v577_v16 = vmul.f32 %v1152_v5, %v1549_v12  ;;  %v573_v17 = vmul.f32 %v1152_v5, %v1551_v13  ;;  %v1562_v19 = vld [vmem:[#allocation7 + $0x30] sm:$0xff]  ;;  %v157_v20 = vld [vmem:[#allocation4] sm:$0xff]  ;;  %v1564_v21 = vld [vmem:[#allocation7 + $0x38] sm:$0xff]  ;;  %vm341_vm3 = vcmask 1044484   ;;  %s1119_s17 = sshll.u32 %s1416_s16, 4  ;;  %s1121_s20 = sshll.u32 %s1848_s14, 4  ;;  %s1120_s17 = int_to_ptr.vmem [resolvable:$true] %s1119_s17  ;;  %s1122_s20 = int_to_ptr.hbm [resolvable:$true] %s1121_s20 }
  0x26   :  { %1145 = vset.pattern.permute.xlu2 %v223_v3  ;;  %1148 = vset.pattern.permute.xlu0 %v223_v3  ;;  %v578_v22 = vmul.f32 %v1152_v5, %v1562_v19  ;;  %v179_v23 = vmul.f32 %v1560_v18, %v157_v20  ;;  %v579_v24 = vmul.f32 %v1152_v5, %v1564_v21  ;;  %v159_v25 = vld [vmem:[#allocation4 + $0x10] sm:$0xff]  ;;  %v174_v27 = vld [vmem:[#allocation10] sm:$0xff]  ;;  %v164_v28 = vld [vmem:[#allocation4 + $0x38] sm:$0xff]  ;;  %vm343_vm4 = vcmask 1045509  }
  0x27   :  { %586 = vadd.xlane.f32.xlu2 %v575_v8  ;;  %584 = vadd.xlane.f32.xlu1 %v574_v9  ;;  %v181_v26 = vmul.f32 %v1560_v18, %v159_v25  ;;  %v611_v29 = vsub.f32 1.0, %v174_v27  ;;  %v186_v30 = vmul.f32 %v1560_v18, %v164_v28  ;;  %v1154_v33 = vld [vmem:[#allocation3] ss:$0 sm:$0xff]  ;;  %v1155_v35 = vld [vmem:[#allocation2] ss:$0 sm:$0xff]  ;;  %v165_v39 = vld [vmem:[#allocation9] sm:$0xff] }
  0x28   :  { %580 = vadd.xlane.f32.xlu0 %v572_v10  ;;  %v218_v41 = vsub.f32 1.0, %v165_v39  ;;  %v162_v45 = vld [vmem:[#allocation4 + $0x28] sm:$0xff]  ;;  %v1573_v51 = vld [vmem:[#allocation4 + $0x18] sm:$0xff]  ;;  %v161_v53 = vld [vmem:[#allocation4 + $0x20] sm:$0xff]  ;;  %vm345_vm5 = vcmask 1046534   ;;  %vm347_vm6 = vcmask 1047559  }
  0x29   :  { %v612_v31 = vmul.f32 -1000000.0, %v611_v29  ;;  %v184_v46 = vmul.f32 %v1560_v18, %v162_v45  ;;  %v158_v48 = vld [vmem:[#allocation4 + $0x8] sm:$0xff]  ;;  %v182_v52 = vmul.f32 %v1560_v18, %v1573_v51  ;;  %v183_v54 = vmul.f32 %v1560_v18, %v161_v53  ;;  %v163_v56 = vld [vmem:[#allocation4 + $0x30] sm:$0xff] }
  0x2a   :  { %v219_v42 = vmul.f32 -1000000.0, %v218_v41  ;;  %v180_v49 = vmul.f32 %v1560_v18, %v158_v48  ;;  %v185_v58 = vmul.f32 %v1560_v18, %v163_v56  ;;  %vm350_vm7 = vcmask 64512  }
  0x2b   :  { %v621_v32 = vperm.slane %v612_v31, 1  ;;  %v628_v34 = vperm.slane %v612_v31, 2  ;;  %v614_v36 = vperm.slane %v612_v31, 0  ;;  %v649_v37 = vperm.slane %v612_v31, 5 }
  0x2c   :  { %v635_v38 = vperm.slane %v612_v31, 3  ;;  %v663_v40 = vperm.slane %v612_v31, 7  ;;  %v221_v43 = vperm.slane %v219_v42, 0  ;;  %v235_v44 = vperm.slane %v219_v42, 2 }
  0x2d   :  { %v242_v47 = vperm.slane %v219_v42, 3  ;;  %v270_v50 = vperm.slane %v219_v42, 7  ;;  %v642_v55 = vperm.slane %v612_v31, 4  ;;  %v656_v60 = vperm.slane %v612_v31, 6 }
  0x2e   :  { %v249_v0 = vperm.slane %v219_v42, 4  ;;  %v228_v9 = vperm.slane %v219_v42, 1 }
  0x2f   :  { %588 = vadd.xlane.f32.xlu2 %v576_v15  ;;  %590 = vadd.xlane.f32.xlu1 %v577_v16 }
  0x30   :  { %582 = vadd.xlane.f32.xlu0 %v573_v17  ;;  %v256_v17 = vperm.slane %v219_v42, 5 }
  0x37   :  { %592 = vadd.xlane.f32.xlu2 %v578_v22  ;;  %187 = vadd.xlane.f32.xlu1 %v179_v23 }
  0x38   :  { %594 = vadd.xlane.f32.xlu0 %v579_v24 }
  0x40   :  { %191 = vadd.xlane.f32.xlu0 %v181_v26 }
  0x48   :  { %201 = vadd.xlane.f32.xlu0 %v186_v30 }
  0x4f   :  { %626 = vperm.xlu2 %1145, %v621_v32  }
  0x50   :  { %600 = vperm.xlu1 %1146, %v1154_v33  }
  0x57   :  { %633 = vperm.xlu2 %1145, %v628_v34  }
  0x58   :  { %207 = vperm.xlu1 %1146, %v1155_v35  }
  0x5c   :  { %619 = vperm.xlu0 %1148, %v614_v36  }
  0x5f   :  { %654 = vperm.xlu2 %1145, %v649_v37  }
  0x60   :  { %1147 = vset.pattern.permute.xlu1 %v223_v3  ;;  %v263_v3 = vperm.slane %v219_v42, 6 }
  0x64   :  { %640 = vperm.xlu0 %1148, %v635_v38  }
  0x6c   :  { %668 = vperm.xlu0 %1148, %v663_v40  }
  0x74   :  { %226 = vperm.xlu0 %1148, %v221_v43  }
  0x7c   :  { %240 = vperm.xlu0 %1148, %v235_v44  }
  0x82   :  { %197 = vadd.xlane.f32.xlu1 %v184_v46 }
  0x84   :  { %247 = vperm.xlu0 %1148, %v242_v47  }
  0x88   :  { %189 = vadd.xlane.f32.xlu2 %v180_v49 }
  0x8c   :  { %275 = vperm.xlu0 %1148, %v270_v50  }
  0x90   :  { %193 = vadd.xlane.f32.xlu2 %v182_v52 }
  0x94   :  { %1151 = vset.pattern.permute.xlu0 %v1415_v14 }
  0x98   :  { %195 = vadd.xlane.f32.xlu2 %v183_v54 }
  0x9a   :  { %v587_v57 = vpop.xlane.xlu2 %586  ;;  %v585_v62 = vpop.xlane.xlu1 %584 }
  0x9b   :  { %647 = vperm.xlu1 %1147, %v642_v55   ;;  %v581_v59 = vpop.xlane.xlu0 %580 }
  0xa0   :  { %199 = vadd.xlane.f32.xlu2 %v185_v58 }
  0xa2   :  { %v589_v61 = vpop.xlane.xlu2 %588  ;;  %v591_v5 = vpop.xlane.xlu1 %590 }
  0xa3   :  { %661 = vperm.xlu1 %1147, %v656_v60   ;;  %v583_v63 = vpop.xlane.xlu0 %582 }
  0xaa   :  { %v593_v1 = vpop.xlane.xlu2 %592  ;;  %v188_v15 = vpop.xlane.xlu1 %187 }
  0xab   :  { %254 = vperm.xlu1 %1147, %v249_v0   ;;  %v595_v8 = vpop.xlane.xlu0 %594 }
  0xb2   :  { %v627_v10 = vpop.permute.xlu2 %626 }
  0xb3   :  { %268 = vperm.xlu1 %1147, %v263_v3   ;;  %v192_v16 = vpop.xlane.xlu0 %191 }
  0xb8   :  { %233 = vperm.xlu2 %1145, %v228_v9  }
  0xba   :  { %v634_v18 = vpop.permute.xlu2 %633 }
  0xbb   :  { %1149 = vset.pattern.permute.xlu1 %v1415_v14  ;;  %v1581_v23 = vpop.xlane.xlu0 %201 }
  0xc0   :  { %261 = vperm.xlu2 %1145, %v256_v17  }
  0xc2   :  { %v601_v20 = vpop.permute.xlu1 %600  ;;  %v655_v28 = vpop.permute.xlu2 %654 }
  0xc3   :  { %v605_v22 = vadd.f32 %v601_v20, %v585_v62  ;;  %v607_v24 = vadd.f32 %v601_v20, %v589_v61  ;;  %v609_v25 = vadd.f32 %v601_v20, %v593_v1  ;;  %v608_v27 = vadd.f32 %v601_v20, %v591_v5 }
  0xc4   :  { %v603_v29 = vadd.f32 %v601_v20, %v581_v59  ;;  %v604_v33 = vadd.f32 %v601_v20, %v583_v63  ;;  %v606_v34 = vadd.f32 %v601_v20, %v587_v57  ;;  %v610_v37 = vadd.f32 %v601_v20, %v595_v8 }
  0xc5   :  { %v1583_v26 = vadd.f32 %v634_v18, %v605_v22  ;;  %v1587_v31 = vadd.f32 %v655_v28, %v608_v27 }
  0xc8   :  { %1150 = vset.pattern.permute.xlu2 %v1415_v14  ;;  %v1595_v14 = vadd.f32 %v627_v10, %v604_v33 }
  0xc9   :  { %701 = vperm.xlu2 %1150, %v1583_v26  }
  0xca   :  { %v208_v40 = vpop.permute.xlu1 %207 }
  0xcb   :  { %v210_v41 = vadd.f32 %v208_v40, %v188_v15  ;;  %v212_v44 = vadd.f32 %v208_v40, %v192_v16  ;;  %v217_v17 = vadd.f32 %v208_v40, %v1581_v23 }
  0xce   :  { %v620_v30 = vpop.permute.xlu0 %619 }
  0xcf   :  { %v1589_v32 = vadd.f32 %v620_v30, %v603_v29 }
  0xd1   :  { %695 = vperm.xlu1 %1149, %v1589_v32   ;;  %710 = vperm.xlu2 %1150, %v1587_v31  }
  0xd6   :  { %v641_v35 = vpop.permute.xlu0 %640 }
  0xd7   :  { %v1593_v36 = vadd.f32 %v641_v35, %v606_v34 }
  0xd9   :  { %704 = vperm.xlu0 %1151, %v1593_v36   ;;  %698 = vperm.xlu1 %1149, %v1595_v14  }
  0xde   :  { %v669_v38 = vpop.permute.xlu0 %668 }
  0xdf   :  { %v1599_v39 = vadd.f32 %v669_v38, %v610_v37 }
  0xe1   :  { %716 = vperm.xlu2 %1150, %v1599_v39  }
  0xe6   :  { %v227_v42 = vpop.permute.xlu0 %226 }
  0xe7   :  { %v1602_v43 = vadd.f32 %v227_v42, %v210_v41 }
  0xe9   :  { %302 = vperm.xlu0 %1151, %v1602_v43  }
  0xee   :  { %v241_v45 = vpop.permute.xlu0 %240 }
  0xef   :  { %v1605_v46 = vadd.f32 %v241_v45, %v212_v44 }
  0xf1   :  { %308 = vperm.xlu2 %1150, %v1605_v46  }
  0xf5   :  { %v198_v52 = vpop.xlane.xlu1 %197 }
  0xf6   :  { %v248_v50 = vpop.permute.xlu0 %247  ;;  %v215_v0 = vadd.f32 %v208_v40, %v198_v52 }
  0xfb   :  { %v190_v47 = vpop.xlane.xlu2 %189 }
  0xfc   :  { %v211_v61 = vadd.f32 %v208_v40, %v190_v47 }
  0xfe   :  { %v276_v16 = vpop.permute.xlu0 %275 }
  0xff   :  { %v1630_v18 = vadd.f32 %v276_v16, %v217_v17 }
 0x103   :  { %v194_v48 = vpop.xlane.xlu2 %193 }
 0x104   :  { %v213_v49 = vadd.f32 %v208_v40, %v194_v48 }
 0x106   :  { %v1608_v53 = vadd.f32 %v248_v50, %v213_v49 }
 0x108   :  { %311 = vperm.xlu0 %1151, %v1608_v53  }
 0x10b   :  { %v196_v54 = vpop.xlane.xlu2 %195 }
 0x10c   :  { %v214_v3 = vadd.f32 %v208_v40, %v196_v54 }
 0x10d   :  { %v648_v55 = vpop.permute.xlu1 %647 }
 0x10e   :  { %v1611_v56 = vadd.f32 %v648_v55, %v607_v24 }
 0x110   :  { %707 = vperm.xlu1 %1149, %v1611_v56  }
 0x113   :  { %v200_v57 = vpop.xlane.xlu2 %199 }
 0x114   :  { %v216_v5 = vadd.f32 %v208_v40, %v200_v57 }
 0x115   :  { %v662_v58 = vpop.permute.xlu1 %661 }
 0x116   :  { %v1614_v59 = vadd.f32 %v662_v58, %v609_v25  ;;  %v1634_v25 = vand.u32 127, %v222_v2 }
 0x118   :  { %713 = vperm.xlu1 %1149, %v1614_v59  }
 0x11b   :  { %v234_v60 = vpop.permute.xlu2 %233 }
 0x11c   :  { %v1617_v63 = vadd.f32 %v234_v60, %v211_v61 }
 0x11d   :  { %v255_v62 = vpop.permute.xlu1 %254 }
 0x11e   :  { %v1622_v10 = vadd.f32 %v255_v62, %v214_v3 }
 0x120   :  { %305 = vperm.xlu1 %1149, %v1617_v63  }
 0x123   :  { %v262_v1 = vpop.permute.xlu2 %261 }
 0x124   :  { %v1620_v8 = vadd.f32 %v262_v1, %v215_v0 }
 0x125   :  { %v269_v9 = vpop.permute.xlu1 %268 }
 0x126   :  { %v1624_v15 = vadd.f32 %v269_v9, %v216_v5  ;;  %317 = vperm.xlu2 %1150, %v1620_v8  }
 0x128   :  { %314 = vperm.xlu1 %1149, %v1622_v10   ;;  %320 = vperm.xlu0 %1151, %v1624_v15  }
 0x12b   :  { %v702_v22 = vpop.permute.xlu2 %701 }
 0x12c   :  { %v720_v33 = vperm.slane %v702_v22, %v1634_v25 }
 0x130   :  { %323 = vperm.xlu1 %1149, %v1630_v18  }
 0x133   :  { %v711_v28 = vpop.permute.xlu2 %710 }
 0x134   :  { %v723_v42 = vperm.slane %v711_v28, %v1634_v25 }
 0x13b   :  { %v717_v40 = vpop.permute.xlu2 %716 }
 0x13c   :  { %v725_v47 = vperm.slane %v717_v40, %v1634_v25 }
 0x143   :  { %v696_v20 = vpop.permute.xlu1 %695 }
 0x144   :  { %v718_v29 = vperm.slane %v696_v20, %v1634_v25 }
 0x14b   :  { %v699_v24 = vpop.permute.xlu1 %698  ;;  %v705_v34 = vpop.permute.xlu0 %704 }
 0x14c   :  { %v719_v27 = vperm.slane %v699_v24, %v1634_v25  ;;  %v721_v2 = vperm.slane %v705_v34, %v1634_v25  ;;  %v309_v58 = vpop.permute.xlu2 %308 }
 0x14d   :  { %v329_v0 = vperm.slane %v309_v58, %v1634_v25 }
 0x14e   :  { %v726_v30 = vsel %vm335_vm0, %v719_v27, %v718_v29 }
 0x14f   :  { %v727_v35 = vsel %vm337_vm1, %v720_v33, %v726_v30 }
 0x150   :  { %v728_v38 = vsel %vm339_vm2, %v721_v2, %v727_v35 }
 0x15b   :  { %v303_v52 = vpop.permute.xlu0 %302 }
 0x15c   :  { %v327_v60 = vperm.slane %v303_v52, %v1634_v25 }
 0x17a   :  { %v312_v61 = vpop.permute.xlu0 %311 }
 0x17b   :  { %v330_v5 = vperm.slane %v312_v61, %v1634_v25 }
 0x180   :  { %v318_v16 = vpop.permute.xlu2 %317 }
 0x181   :  { %v332_v22 = vperm.slane %v318_v16, %v1634_v25 }
 0x182   :  { %v708_v23 = vpop.permute.xlu1 %707 }
 0x183   :  { %v722_v37 = vperm.slane %v708_v23, %v1634_v25 }
 0x185   :  { %v729_v41 = vsel %vm341_vm3, %v722_v37, %v728_v38 }
 0x186   :  { %v730_v48 = vsel %vm343_vm4, %v723_v42, %v729_v41 }
 0x18a   :  { %v714_v44 = vpop.permute.xlu1 %713 }
 0x18b   :  { %v724_v45 = vperm.slane %v714_v44, %v1634_v25 }
 0x18d   :  { %v731_v49 = vsel %vm345_vm5, %v724_v45, %v730_v48 }
 0x18e   :  { %v732_v50 = vsel %vm347_vm6, %v725_v47, %v731_v49 }
 0x18f   :  { %v734_v54 = vsel %vm350_vm7, %v732_v50, -inf }
 0x190   :  { %735 = vmax.xlane.f32.xlu2 %v734_v54 }
 0x192   :  { %v306_v55 = vpop.permute.xlu1 %305 }
 0x193   :  { %v328_v57 = vperm.slane %v306_v55, %v1634_v25 }
 0x195   :  { %v336_v62 = vsel %vm335_vm0, %v328_v57, %v327_v60 }
 0x196   :  { %v338_v1 = vsel %vm337_vm1, %v329_v0, %v336_v62 }
 0x197   :  { %v340_v17 = vsel %vm339_vm2, %v330_v5, %v338_v1 }
 0x19a   :  { %v315_v3 = vpop.permute.xlu1 %314  ;;  %v321_v24 = vpop.permute.xlu0 %320 }
 0x19b   :  { %v331_v9 = vperm.slane %v315_v3, %v1634_v25  ;;  %v333_v28 = vperm.slane %v321_v24, %v1634_v25 }
 0x19d   :  { %v342_v20 = vsel %vm341_vm3, %v331_v9, %v340_v17 }
 0x19e   :  { %v344_v27 = vsel %vm343_vm4, %v332_v22, %v342_v20 }
 0x19f   :  { %v346_v23 = vsel %vm345_vm5, %v333_v28, %v344_v27 }
 0x1a2   :  { %v324_v29 = vpop.permute.xlu1 %323 }
 0x1a3   :  { %v334_v30 = vperm.slane %v324_v29, %v1634_v25 }
 0x1a5   :  { %v348_v33 = vsel %vm347_vm6, %v334_v30, %v346_v23 }
 0x1a6   :  { %v351_v34 = vsel %vm350_vm7, %v348_v33, -inf }
 0x1a7   :  { %352 = vmax.xlane.f32.xlu0 %v351_v34 }
 0x203   :  { %v1668_v35 = vpop.xlane.xlu2 %735 }
 0x204   :  { %v743_v37 = vperm.slane %v1668_v35, 5  ;;  %v738_v2 = vperm.slane %v1668_v35, 0  ;;  %v745_v38 = vperm.slane %v1668_v35, 7  ;;  %v739_v44 = vperm.slane %v1668_v35, 1 }
 0x205   :  { %v740_v52 = vperm.slane %v1668_v35, 2  ;;  %v741_v55 = vperm.slane %v1668_v35, 3  ;;  %v742_v5 = vperm.slane %v1668_v35, 4  ;;  %v744_v29 = vperm.slane %v1668_v35, 6 }
 0x206   :  { %v759_v40 = vsub.f32 %v1587_v31, %v743_v37  ;;  %v754_v41 = vsub.f32 %v1589_v32, %v738_v2  ;;  %v761_v42 = vsub.f32 %v1599_v39, %v745_v38  ;;  %v755_v49 = vsub.f32 %v1595_v14, %v739_v44 }
 0x207   :  { %v756_v39 = vsub.f32 %v1583_v26, %v740_v52  ;;  %v757_v62 = vsub.f32 %v1593_v36, %v741_v55 }
 0x208   :  { %v772_v45 = vmul.f32 1.442695, %v759_v40  ;;  %v762_v47 = vmul.f32 1.442695, %v754_v41  ;;  %v776_v48 = vmul.f32 1.442695, %v761_v42 }
 0x209   :  { %v764_v50 = vmul.f32 1.442695, %v755_v49  ;;  %v766_v14 = vmul.f32 1.442695, %v756_v39  ;;  %v768_v17 = vmul.f32 1.442695, %v757_v62 }
 0x20a   :  { %1159 = vpow2.f32 %v772_v45 }
 0x20b   :  { %1161 = vpow2.f32 %v762_v47 }
 0x20c   :  { %1163 = vpow2.f32 %v776_v48 }
 0x20d   :  { %1165 = vpow2.f32 %v764_v50 }
 0x20e   :  { %1167 = vpow2.f32 %v766_v14 }
 0x210   :  { %v1679_v54 = vpop.eup %1159 }
 0x211   :  { %v1681_v31 = vpop.eup %1161  ;;  %802 = vperm.xlu2 %1150, %v1679_v54  }
 0x212   :  { %v1684_v32 = vpop.eup %1163  ;;  %787 = vperm.xlu1 %1149, %v1681_v31  }
 0x213   :  { %808 = vperm.xlu0 %1151, %v1684_v32   ;;  %v1690_v57 = vpop.eup %1165 }
 0x214   :  { %v1703_v20 = vpop.eup %1167 }
 0x21a   :  { %790 = vperm.xlu1 %1149, %v1690_v57   ;;  %v1693_v58 = vpop.xlane.xlu0 %352 }
 0x21b   :  { %v358_v60 = vperm.slane %v1693_v58, 3  ;;  %v357_v61 = vperm.slane %v1693_v58, 2  ;;  %v361_v1 = vperm.slane %v1693_v58, 6  ;;  %v360_v3 = vperm.slane %v1693_v58, 5 }
 0x21c   :  { %v355_v33 = vperm.slane %v1693_v58, 0  ;;  %v359_v42 = vperm.slane %v1693_v58, 4  ;;  %v362_v47 = vperm.slane %v1693_v58, 7 }
 0x21d   :  { %v374_v0 = vsub.f32 %v1608_v53, %v358_v60  ;;  %v373_v26 = vsub.f32 %v1605_v46, %v357_v61  ;;  %v377_v22 = vsub.f32 %v1624_v15, %v361_v1  ;;  %v376_v36 = vsub.f32 %v1620_v8, %v360_v3 }
 0x21e   :  { %v758_v46 = vsub.f32 %v1611_v56, %v742_v5  ;;  %v760_v56 = vsub.f32 %v1614_v59, %v744_v29  ;;  %v371_v37 = vsub.f32 %v1602_v43, %v355_v33  ;;  %v356_v59 = vperm.slane %v1693_v58, 1 }
 0x21f   :  { %v385_v9 = vmul.f32 1.442695, %v374_v0  ;;  %v383_v16 = vmul.f32 1.442695, %v373_v26  ;;  %v391_v53 = vmul.f32 1.442695, %v377_v22  ;;  %v375_v43 = vsub.f32 %v1622_v10, %v359_v42 }
 0x220   :  { %v389_v24 = vmul.f32 1.442695, %v376_v36  ;;  %v770_v28 = vmul.f32 1.442695, %v758_v46  ;;  %v774_v23 = vmul.f32 1.442695, %v760_v56  ;;  %v372_v40 = vsub.f32 %v1617_v63, %v356_v59 }
 0x221   :  { %1169 = vpow2.f32 %v385_v9  ;;  %v379_v2 = vmul.f32 1.442695, %v371_v37  ;;  %v387_v45 = vmul.f32 1.442695, %v375_v43  ;;  %v378_v63 = vsub.f32 %v1630_v18, %v362_v47 }
 0x222   :  { %793 = vperm.xlu1 %1149, %v1703_v20   ;;  %1171 = vpow2.f32 %v383_v16  ;;  %v381_v41 = vmul.f32 1.442695, %v372_v40 }
 0x223   :  { %1173 = vpow2.f32 %v768_v17  ;;  %v393_v49 = vmul.f32 1.442695, %v378_v63 }
 0x224   :  { %1175 = vpow2.f32 %v391_v53 }
 0x225   :  { %1177 = vpow2.f32 %v389_v24 }
 0x226   :  { %1179 = vpow2.f32 %v770_v28 }
 0x227   :  { %v1709_v27 = vpop.eup %1169  ;;  %1181 = vpow2.f32 %v774_v23 }
 0x228   :  { %v1712_v30 = vpop.eup %1171  ;;  %413 = vperm.xlu0 %1151, %v1709_v27   ;;  %1183 = vpow2.f32 %v379_v2 }
 0x229   :  { %v1715_v15 = vpop.eup %1173  ;;  %410 = vperm.xlu2 %1150, %v1712_v30   ;;  %1185 = vpow2.f32 %v381_v41 }
 0x22a   :  { %796 = vperm.xlu1 %1149, %v1715_v15   ;;  %v1720_v8 = vpop.eup %1175  ;;  %1187 = vpow2.f32 %v387_v45 }
 0x22b   :  { %v1723_v34 = vpop.eup %1177  ;;  %1189 = vpow2.f32 %v393_v49 }
 0x22c   :  { %v1726_v35 = vpop.eup %1179 }
 0x22d   :  { %v1732_v38 = vpop.eup %1181 }
 0x22e   :  { %v1737_v44 = vpop.eup %1183 }
 0x22f   :  { %v1742_v48 = vpop.eup %1185 }
 0x230   :  { %422 = vperm.xlu0 %1151, %v1720_v8   ;;  %v1746_v50 = vpop.eup %1187 }
 0x231   :  { %419 = vperm.xlu2 %1150, %v1723_v34   ;;  %v1749_v52 = vpop.eup %1189 }
 0x232   :  { %799 = vperm.xlu1 %1149, %v1726_v35  }
 0x23a   :  { %805 = vperm.xlu1 %1149, %v1732_v38  }
 0x242   :  { %404 = vperm.xlu1 %1149, %v1737_v44  }
 0x24a   :  { %407 = vperm.xlu1 %1149, %v1742_v48  }
 0x252   :  { %416 = vperm.xlu1 %1149, %v1746_v50  }
 0x25a   :  { %425 = vperm.xlu1 %1149, %v1749_v52  }
 0x26b   :  { %v803_v1 = vpop.permute.xlu2 %802 }
 0x26c   :  { %v815_v17 = vperm.slane %v803_v1, %v1634_v25 }
 0x283   :  { %v411_v23 = vpop.permute.xlu2 %410 }
 0x284   :  { %v788_v10 = vpop.permute.xlu1 %787  ;;  %v429_v41 = vperm.slane %v411_v23, %v1634_v25 }
 0x285   :  { %v810_v18 = vperm.slane %v788_v10, %v1634_v25  ;;  %v809_v9 = vpop.permute.xlu0 %808 }
 0x286   :  { %v817_v46 = vperm.slane %v809_v9, %v1634_v25 }
 0x28b   :  { %v420_v63 = vpop.permute.xlu2 %419 }
 0x28c   :  { %v791_v39 = vpop.permute.xlu1 %790 }
 0x28d   :  { %v811_v58 = vperm.slane %v791_v39, %v1634_v25  ;;  %v432_v39 = vperm.slane %v420_v63, %v1634_v25  ;;  %v1020_v63 = vld [vmem:[#allocation13 + $0x68] sm:$0xff] }
 0x28f   :  { %v818_v26 = vsel %vm335_vm0, %v811_v58, %v810_v18 }
 0x294   :  { %v794_v14 = vpop.permute.xlu1 %793 }
 0x295   :  { %v812_v61 = vperm.slane %v794_v14, %v1634_v25 }
 0x297   :  { %v819_v3 = vsel %vm337_vm1, %v812_v61, %v818_v26 }
 0x29a   :  { %v414_v2 = vpop.permute.xlu0 %413 }
 0x29b   :  { %v430_v45 = vperm.slane %v414_v2, %v1634_v25 }
 0x29c   :  { %v797_v55 = vpop.permute.xlu1 %796 }
 0x29d   :  { %v813_v62 = vperm.slane %v797_v55, %v1634_v25 }
 0x29f   :  { %v820_v5 = vsel %vm339_vm2, %v813_v62, %v819_v3 }
 0x2a2   :  { %v423_v14 = vpop.permute.xlu0 %422 }
 0x2a3   :  { %v433_v58 = vperm.slane %v423_v14, %v1634_v25 }
 0x2a4   :  { %v800_v60 = vpop.permute.xlu1 %799 }
 0x2a5   :  { %v814_v0 = vperm.slane %v800_v60, %v1634_v25 }
 0x2a7   :  { %v821_v16 = vsel %vm341_vm3, %v814_v0, %v820_v5 }
 0x2a8   :  { %v822_v53 = vsel %vm343_vm4, %v815_v17, %v821_v16 }
 0x2ac   :  { %v806_v22 = vpop.permute.xlu1 %805 }
 0x2ad   :  { %v816_v36 = vperm.slane %v806_v22, %v1634_v25 }
 0x2af   :  { %v823_v24 = vsel %vm345_vm5, %v816_v36, %v822_v53 }
 0x2b0   :  { %v824_v28 = vsel %vm347_vm6, %v817_v46, %v823_v24 }
 0x2b1   :  { %v826_v29 = vsel %vm350_vm7, %v824_v28, 0.0 }
 0x2b2   :  { %827 = vadd.xlane.f32.xlu2 %v826_v29 }
 0x2b4   :  { %v405_v56 = vpop.permute.xlu1 %404 }
 0x2b5   :  { %v427_v59 = vperm.slane %v405_v56, %v1634_v25 }
 0x2bc   :  { %v408_v33 = vpop.permute.xlu1 %407 }
 0x2bd   :  { %v428_v37 = vperm.slane %v408_v33, %v1634_v25 }
 0x2bf   :  { %v435_v40 = vsel %vm335_vm0, %v428_v37, %v427_v59 }
 0x2c0   :  { %v436_v42 = vsel %vm337_vm1, %v429_v41, %v435_v40 }
 0x2c1   :  { %v437_v49 = vsel %vm339_vm2, %v430_v45, %v436_v42 }
 0x2c4   :  { %v417_v43 = vpop.permute.xlu1 %416 }
 0x2c5   :  { %v431_v47 = vperm.slane %v417_v43, %v1634_v25 }
 0x2c7   :  { %v438_v10 = vsel %vm341_vm3, %v431_v47, %v437_v49  ;;  %v1021_v47 = vld [vmem:[#allocation13 + $0x70] sm:$0xff]  ;;  %v1018_v49 = vld [vmem:[#allocation13 + $0x58] sm:$0xff] }
 0x2c8   :  { %v439_v55 = vsel %vm343_vm4, %v432_v39, %v438_v10  ;;  %v1017_v10 = vld [vmem:[#allocation13 + $0x50] sm:$0xff]  ;;  %v1015_v39 = vld [vmem:[#allocation13 + $0x40] sm:$0xff] }
 0x2c9   :  { %v440_v18 = vsel %vm345_vm5, %v433_v58, %v439_v55  ;;  %v1013_v55 = vld [vmem:[#allocation13 + $0x30] sm:$0xff] }
 0x2cc   :  { %v426_v60 = vpop.permute.xlu1 %425 }
 0x2cd   :  { %v434_v61 = vperm.slane %v426_v60, %v1634_v25 }
 0x2cf   :  { %v441_v62 = vsel %vm347_vm6, %v434_v61, %v440_v18  ;;  %v1012_v61 = vld [vmem:[#allocation13 + $0x28] sm:$0xff] }
 0x2d0   :  { %v443_v0 = vsel %vm350_vm7, %v441_v62, 0.0  ;;  %v1011_v62 = vld [vmem:[#allocation13 + $0x20] sm:$0xff] }
 0x2d1   :  { %444 = vadd.xlane.f32.xlu0 %v443_v0 }
 0x325   :  { %v828_v26 = vpop.xlane.xlu2 %827 }
 0x326   :  { %1191 = vrcp.f32 %v828_v26 }
 0x32c   :  { %v1192_v1 = vpop.eup %1191 }
 0x32d   :  { %v836_v3 = vperm.slane %v1192_v1, 5  ;;  %v831_v5 = vperm.slane %v1192_v1, 0  ;;  %v837_v9 = vperm.slane %v1192_v1, 6  ;;  %v832_v25 = vperm.slane %v1192_v1, 1 }
 0x32e   :  { %v833_v46 = vperm.slane %v1192_v1, 2  ;;  %v834_v24 = vperm.slane %v1192_v1, 3  ;;  %v835_v29 = vperm.slane %v1192_v1, 4  ;;  %v838_v2 = vperm.slane %v1192_v1, 7 }
 0x32f   :  { %v852_v16 = vmul.f32 %v1679_v54, %v836_v3  ;;  %v847_v17 = vmul.f32 %v1681_v31, %v831_v5  ;;  %v853_v22 = vmul.f32 %v1732_v38, %v837_v9  ;;  %v848_v36 = vmul.f32 %v1690_v57, %v832_v25  ;;  %v1010_v3 = vld [vmem:[#allocation13 + $0x18] sm:$0xff] }
 0x330   :  { %v849_v53 = vmul.f32 %v1703_v20, %v833_v46  ;;  %v850_v54 = vmul.f32 %v1715_v15, %v834_v24  ;;  %v851_v57 = vmul.f32 %v1726_v35, %v835_v29  ;;  %v854_v40 = vmul.f32 %v1684_v32, %v838_v2  ;;  %v1022_v32 = vld [vmem:[#allocation13 + $0x78] sm:$0xff]  ;;  %v1007_v24 = vld [vmem:[#allocation13] sm:$0xff] }
 0x331   :  { %882 = vperm.xlu2 %1150, %v852_v16   ;;  %857 = vperm.xlu1 %1149, %v847_v17   ;;  %v1009_v16 = vld [vmem:[#allocation13 + $0x10] sm:$0xff] }
 0x332   :  { %887 = vperm.xlu0 %1151, %v853_v22   ;;  %1043 = vmatpush.msra.mxu1 %v1022_v32 }
 0x334   :  { %1044 = vmatpush.msra.mxu1 %v1021_v47 }
 0x336   :  { %1045 = vmatpush.msra.mxu1 %v1020_v63  ;;  %v961_v63 = vld [vmem:[#allocation12 + $0x50] sm:$0xff] }
 0x339   :  { %862 = vperm.xlu1 %1149, %v848_v36  }
 0x341   :  { %867 = vperm.xlu1 %1149, %v849_v53  }
 0x344   :  { %v445_v28 = vpop.xlane.xlu0 %444 }
 0x345   :  { %1193 = vrcp.f32 %v445_v28 }
 0x349   :  { %872 = vperm.xlu1 %1149, %v850_v54  }
 0x34b   :  { %v1194_v31 = vpop.eup %1193 }
 0x34c   :  { %v451_v38 = vperm.slane %v1194_v31, 3  ;;  %v450_v56 = vperm.slane %v1194_v31, 2  ;;  %v454_v20 = vperm.slane %v1194_v31, 6  ;;  %v453_v37 = vperm.slane %v1194_v31, 5 }
 0x34d   :  { %v449_v35 = vperm.slane %v1194_v31, 1  ;;  %v452_v42 = vperm.slane %v1194_v31, 4 }
 0x34e   :  { %v467_v23 = vmul.f32 %v1709_v27, %v451_v38  ;;  %v466_v33 = vmul.f32 %v1712_v30, %v450_v56  ;;  %v470_v59 = vmul.f32 %v1720_v8, %v454_v20  ;;  %v469_v15 = vmul.f32 %v1723_v34, %v453_v37  ;;  %v966_v38 = vld [vmem:[#allocation12 + $0x78] sm:$0xff] }
 0x34f   :  { %v448_v27 = vperm.slane %v1194_v31, 0  ;;  %v465_v41 = vmul.f32 %v1742_v48, %v449_v35  ;;  %v468_v43 = vmul.f32 %v1746_v50, %v452_v42  ;;  %v455_v8 = vperm.slane %v1194_v31, 7  ;;  %v1016_v50 = vld [vmem:[#allocation13 + $0x48] sm:$0xff]  ;;  %987 = vmatpush.msra.mxu0 %v966_v38  ;;  %v955_v38 = vld [vmem:[#allocation12 + $0x20] sm:$0xff] }
 0x350   :  { %489 = vperm.xlu0 %1151, %v467_v23   ;;  %484 = vperm.xlu2 %1150, %v466_v33   ;;  %v965_v33 = vld [vmem:[#allocation12 + $0x70] sm:$0xff] }
 0x351   :  { %877 = vperm.xlu1 %1149, %v851_v57   ;;  %v464_v30 = vmul.f32 %v1737_v44, %v448_v27  ;;  %v471_v34 = vmul.f32 %v1749_v52, %v455_v8  ;;  %v1019_v44 = vld [vmem:[#allocation13 + $0x60] sm:$0xff]  ;;  %v1014_v52 = vld [vmem:[#allocation13 + $0x38] sm:$0xff]  ;;  %988 = vmatpush.msra.mxu0 %v965_v33 }
 0x352   :  { %1046 = vmatpush.msra.mxu1 %v1019_v44  ;;  %v962_v8 = vld [vmem:[#allocation12 + $0x58] sm:$0xff] }
 0x354   :  { %1047 = vmatpush.msra.mxu1 %v1018_v49 }
 0x356   :  { %1048 = vmatpush.msra.mxu1 %v1017_v10 }
 0x358   :  { %504 = vperm.xlu0 %1151, %v470_v59   ;;  %499 = vperm.xlu2 %1150, %v469_v15  }
 0x359   :  { %892 = vperm.xlu1 %1149, %v854_v40   ;;  %1049 = vmatpush.msra.mxu1 %v1016_v50 }
 0x35b   :  { %1050 = vmatpush.msra.mxu1 %v1015_v39  ;;  %v960_v39 = vld [vmem:[#allocation12 + $0x48] sm:$0xff] }
 0x35d   :  { %1051 = vmatpush.msra.mxu1 %v1014_v52 }
 0x35f   :  { %1052 = vmatpush.msra.mxu1 %v1013_v55 }
 0x361   :  { %474 = vperm.xlu1 %1149, %v464_v30   ;;  %1053 = vmatpush.msra.mxu1 %v1012_v61  ;;  %v963_v30 = vld [vmem:[#allocation12 + $0x60] sm:$0xff] }
 0x363   :  { %1054 = vmatpush.msra.mxu1 %v1011_v62 }
 0x365   :  { %1055 = vmatpush.msra.mxu1 %v1010_v3 }
 0x367   :  { %1056 = vmatpush.msra.mxu1 %v1009_v16 }
 0x369   :  { %479 = vperm.xlu1 %1149, %v465_v41  }
 0x371   :  { %494 = vperm.xlu1 %1149, %v468_v43  }
 0x379   :  { %509 = vperm.xlu1 %1149, %v471_v34  }
 0x38b   :  { %v883_v26 = vpop.permute.xlu2 %882 }
 0x38c   :  { %v900_v17 = vmul.f32 %v883_v26, %v1549_v12 }
 0x38e   :  { %v933_v28 = vrot.slane %v900_v17, 4 }
 0x390   :  { %v934_v57 = vadd.f32 %v933_v28, %v900_v17  ;;  %v956_v28 = vld [vmem:[#allocation12 + $0x28] sm:$0xff] }
 0x392   :  { %v935_v35 = vrot.slane %v934_v57, 2 }
 0x394   :  { %v936_v44 = vadd.f32 %v935_v35, %v934_v57 }
 0x396   :  { %v937_v62 = vrot.slane %v936_v44, 1 }
 0x3a3   :  { %v858_v45 = vpop.permute.xlu1 %857 }
 0x3a4   :  { %v895_v18 = vmul.f32 %v858_v45, %v1542_v7  ;;  %v1008_v7 = vld [vmem:[#allocation13 + $0x8] sm:$0xff] }
 0x3a5   :  { %1057 = vmatpush.msra.mxu1 %v1008_v7 }
 0x3a6   :  { %v903_v5 = vrot.slane %v895_v18, 4 }
 0x3a7   :  { %1058 = vmatpush.msra.mxu1 %v1007_v24 }
 0x3a8   :  { %v904_v36 = vadd.f32 %v903_v5, %v895_v18  ;;  %v959_v18 = vld [vmem:[#allocation12 + $0x40] sm:$0xff] }
 0x3aa   :  { %v905_v12 = vrot.slane %v904_v36, 2 }
 0x3ab   :  { %v863_v48 = vpop.permute.xlu1 %862 }
 0x3ac   :  { %v896_v58 = vmul.f32 %v863_v48, %v1551_v13  ;;  %v888_v13 = vpop.permute.xlu0 %887  ;;  %v906_v59 = vadd.f32 %v905_v12, %v904_v36  ;;  %v1197_v36 = vld [vmem:[#allocation4] sm:$0xff] }
 0x3ad   :  { %v901_v53 = vmul.f32 %v888_v13, %v1562_v19  ;;  %v964_v19 = vld [vmem:[#allocation12 + $0x68] sm:$0xff] }
 0x3ae   :  { %v909_v0 = vrot.slane %v896_v58, 4  ;;  %989 = vmatpush.msra.mxu0 %v964_v19  ;;  %v907_v34 = vrot.slane %v906_v59, 1 }
 0x3af   :  { %v939_v23 = vrot.slane %v901_v53, 4 }
 0x3b0   :  { %v910_v22 = vadd.f32 %v909_v0, %v896_v58  ;;  %990 = vmatpush.msra.mxu0 %v963_v30  ;;  %v908_v52 = vadd.f32 %v907_v34, %v906_v59  ;;  %v1199_v59 = vld [vmem:[#allocation4 + $0x28] sm:$0xff] }
 0x3b1   :  { %v940_v27 = vadd.f32 %v939_v23, %v901_v53  ;;  %v1198_v53 = vld [vmem:[#allocation4 + $0x10] sm:$0xff] }
 0x3b2   :  { %v911_v54 = vrot.slane %v910_v22, 2  ;;  %991 = vmatpush.msra.mxu0 %v962_v8 }
 0x3b3   :  { %v868_v14 = vpop.permute.xlu1 %867 }
 0x3b4   :  { %v897_v60 = vmul.f32 %v868_v14, %v1540_v6  ;;  %v912_v20 = vadd.f32 %v911_v54, %v910_v22  ;;  %992 = vmatpush.msra.mxu0 %v961_v63  ;;  %v485_v14 = vpop.permute.xlu2 %484 }
 0x3b5   :  { %v514_v24 = vmul.f32 %v1198_v53, %v485_v14 }
 0x3b6   :  { %v915_v1 = vrot.slane %v897_v60, 4  ;;  %v913_v41 = vrot.slane %v912_v20, 1  ;;  %993 = vmatpush.msra.mxu0 %v960_v39 }
 0x3b7   :  { %v532_v57 = vrot.slane %v514_v24, 4 }
 0x3b8   :  { %v916_v25 = vadd.f32 %v915_v1, %v897_v60  ;;  %v914_v49 = vadd.f32 %v913_v41, %v912_v20  ;;  %994 = vmatpush.msra.mxu0 %v959_v18  ;;  %v1200_v41 = vld [vmem:[#allocation4 + $0x8] sm:$0xff] }
 0x3ba   :  { %v917_v29 = vrot.slane %v916_v25, 2  ;;  %v1035_v0 = vsel %vm335_vm0, %v914_v49, %v908_v52 }
 0x3bb   :  { %v873_v9 = vpop.permute.xlu1 %872 }
 0x3bc   :  { %v898_v6 = vmul.f32 %v873_v9, %v1535_v4  ;;  %v918_v2 = vadd.f32 %v917_v29, %v916_v25  ;;  %v938_v25 = vadd.f32 %v937_v62, %v936_v44  ;;  %v500_v23 = vpop.permute.xlu2 %499 }
 0x3be   :  { %v921_v46 = vrot.slane %v898_v6, 4  ;;  %v919_v43 = vrot.slane %v918_v2, 1 }
 0x3c0   :  { %v922_v31 = vadd.f32 %v921_v46, %v898_v6  ;;  %v920_v50 = vadd.f32 %v919_v43, %v918_v2  ;;  %v957_v6 = vld [vmem:[#allocation12 + $0x30] sm:$0xff]  ;;  %v951_v43 = vld [vmem:[#allocation12] sm:$0xff] }
 0x3c2   :  { %v923_v56 = vrot.slane %v922_v31, 2  ;;  %v1036_v3 = vsel %vm337_vm1, %v920_v50, %v1035_v0  ;;  %v490_v5 = vpop.permute.xlu0 %489 }
 0x3c3   :  { %v878_v4 = vpop.permute.xlu1 %877 }
 0x3c4   :  { %v899_v37 = vmul.f32 %v878_v4, %v1547_v11  ;;  %v924_v15 = vadd.f32 %v923_v56, %v922_v31  ;;  %v941_v11 = vrot.slane %v940_v27, 2  ;;  %v954_v56 = vld [vmem:[#allocation12 + $0x18] sm:$0xff]  ;;  %v515_v4 = vmul.f32 %v490_v5, %v1573_v51 }
 0x3c5   :  { %v533_v51 = vadd.f32 %v532_v57, %v514_v24 }
 0x3c6   :  { %v927_v40 = vrot.slane %v899_v37, 4  ;;  %v925_v32 = vrot.slane %v924_v15, 1  ;;  %v942_v61 = vadd.f32 %v941_v11, %v940_v27  ;;  %v952_v27 = vld [vmem:[#allocation12 + $0x8] sm:$0xff]  ;;  %v538_v30 = vrot.slane %v515_v4, 4 }
 0x3c7   :  { %v534_v44 = vrot.slane %v533_v51, 2 }
 0x3c8   :  { %v928_v42 = vadd.f32 %v927_v40, %v899_v37  ;;  %v926_v55 = vadd.f32 %v925_v32, %v924_v15  ;;  %v943_v17 = vrot.slane %v942_v61, 1  ;;  %v953_v37 = vld [vmem:[#allocation12 + $0x10] sm:$0xff]  ;;  %v517_v15 = vmul.f32 %v1199_v59, %v500_v23 }
 0x3ca   :  { %v929_v45 = vrot.slane %v928_v42, 2  ;;  %v1037_v16 = vsel %vm339_vm2, %v926_v55, %v1036_v3  ;;  %v944_v12 = vadd.f32 %v943_v17, %v942_v61  ;;  %v505_v35 = vpop.permute.xlu0 %504  ;;  %v550_v32 = vrot.slane %v517_v15, 4  ;;  %v1202_v55 = vld [vmem:[#allocation4 + $0x20] sm:$0xff] }
 0x3cb   :  { %v893_v47 = vpop.permute.xlu1 %892 }
 0x3cc   :  { %v930_v48 = vadd.f32 %v929_v45, %v928_v42  ;;  %v902_v10 = vmul.f32 %v893_v47, %v1564_v21  ;;  %v958_v21 = vld [vmem:[#allocation12 + $0x38] sm:$0xff]  ;;  %v1201_v45 = vld [vmem:[#allocation4 + $0x30] sm:$0xff]  ;;  %v539_v47 = vadd.f32 %v538_v30, %v515_v4 }
 0x3cd   :  { %995 = vmatpush.msra.mxu0 %v958_v21  ;;  %v518_v11 = vmul.f32 %v1201_v45, %v505_v35  ;;  %v1088_v30 = vld [vmem:[#allocation15 + $0x78] sm:$0xff]  ;;  %v1087_v35 = vld [vmem:[#allocation15 + $0x70] sm:$0xff] }
 0x3ce   :  { %v931_v58 = vrot.slane %v930_v48, 1  ;;  %v945_v60 = vrot.slane %v902_v10, 4  ;;  %v540_v52 = vrot.slane %v539_v47, 2  ;;  %1093 = vmatpush.msra.mxu2 %v1088_v30  ;;  %v1079_v45 = vld [vmem:[#allocation15 + $0x30] sm:$0xff] }
 0x3cf   :  { %996 = vmatpush.msra.mxu0 %v957_v6  ;;  %v556_v50 = vrot.slane %v518_v11, 4 }
 0x3d0   :  { %v932_v26 = vadd.f32 %v931_v58, %v930_v48  ;;  %v946_v1 = vadd.f32 %v945_v60, %v902_v10  ;;  %v551_v10 = vadd.f32 %v550_v32, %v517_v15  ;;  %v535_v60 = vadd.f32 %v534_v44, %v533_v51  ;;  %1094 = vmatpush.msra.mxu2 %v1087_v35  ;;  %v1084_v51 = vld [vmem:[#allocation15 + $0x58] sm:$0xff] }
 0x3d1   :  { %997 = vmatpush.msra.mxu0 %v956_v28  ;;  %v1080_v32 = vld [vmem:[#allocation15 + $0x38] sm:$0xff] }
 0x3d2   :  { %v947_v9 = vrot.slane %v946_v1, 2  ;;  %v1038_v22 = vsel %vm341_vm3, %v932_v26, %v1037_v16  ;;  %v552_v0 = vrot.slane %v551_v10, 2  ;;  %v557_v26 = vadd.f32 %v556_v50, %v518_v11  ;;  %v1078_v11 = vld [vmem:[#allocation15 + $0x28] sm:$0xff]  ;;  %v1076_v44 = vld [vmem:[#allocation15 + $0x18] sm:$0xff] }
 0x3d3   :  { %v475_v13 = vpop.permute.xlu1 %474  ;;  %v1039_v29 = vsel %vm343_vm4, %v938_v25, %v1038_v22  ;;  %998 = vmatpush.msra.mxu0 %v955_v38  ;;  %v536_v5 = vrot.slane %v535_v60, 1 }
 0x3d4   :  { %v948_v7 = vadd.f32 %v947_v9, %v946_v1  ;;  %v512_v46 = vmul.f32 %v1197_v36, %v475_v13  ;;  %v1040_v20 = vsel %vm345_vm5, %v944_v12, %v1039_v29  ;;  %v541_v1 = vadd.f32 %v540_v52, %v539_v47  ;;  %v1203_v36 = vld [vmem:[#allocation4 + $0x38] sm:$0xff] }
 0x3d5   :  { %999 = vmatpush.msra.mxu0 %v954_v56  ;;  %v553_v17 = vadd.f32 %v552_v0, %v551_v10  ;;  %v558_v13 = vrot.slane %v557_v26, 2  ;;  %v537_v53 = vadd.f32 %v536_v5, %v535_v60  ;;  %v1156_v47 = vld [vmem:[%s1845_s11] ss:$0 sm:$0xff]  ;;  %v1075_v10 = vld [vmem:[#allocation15 + $0x10] sm:$0xff] }
 0x3d6   :  { %v949_v54 = vrot.slane %v948_v7, 1  ;;  %v520_v31 = vrot.slane %v512_v46, 4  ;;  %v542_v6 = vrot.slane %v541_v1, 1  ;;  %v1158_v5 = vld [vmem:[%s1847_s13] ss:$0 sm:$0xff] }
 0x3d7   :  { %1000 = vmatpush.msra.mxu0 %v953_v37  ;;  %v554_v29 = vrot.slane %v553_v17, 1 }
 0x3d8   :  { %v950_v33 = vadd.f32 %v949_v54, %v948_v7  ;;  %v521_v2 = vadd.f32 %v520_v31, %v512_v46  ;;  %v559_v54 = vadd.f32 %v558_v13, %v557_v26  ;;  %v543_v38 = vadd.f32 %v542_v6, %v541_v1 }
 0x3d9   :  { %1001 = vmatpush.msra.mxu0 %v952_v27 }
 0x3da   :  { %v1041_v19 = vsel %vm347_vm6, %v950_v33, %v1040_v20  ;;  %v522_v8 = vrot.slane %v521_v2, 2  ;;  %v560_v33 = vrot.slane %v559_v54, 1  ;;  %v555_v20 = vadd.f32 %v554_v29, %v553_v17 }
 0x3db   :  { %1059 = vmatmul.f32.vlgmr.msra.gmra.mxu1 %v1041_v19  ;;  %v480_v40 = vpop.permute.xlu1 %479  ;;  %1002 = vmatpush.msra.mxu0 %v951_v43  ;;  %v1083_v43 = vld [vmem:[#allocation15 + $0x50] sm:$0xff] }
 0x3dc   :  { %v513_v42 = vmul.f32 %v1200_v41, %v480_v40  ;;  %v523_v49 = vadd.f32 %v522_v8, %v521_v2  ;;  %v561_v59 = vadd.f32 %v560_v33, %v559_v54  ;;  %v1086_v41 = vld [vmem:[#allocation15 + $0x68] sm:$0xff] }
 0x3dd   :  { %1095 = vmatpush.msra.mxu2 %v1086_v41  ;;  %v1082_v8 = vld [vmem:[#allocation15 + $0x48] sm:$0xff] }
 0x3de   :  { %v526_v34 = vrot.slane %v513_v42, 4  ;;  %v524_v61 = vrot.slane %v523_v49, 1 }
 0x3e0   :  { %v527_v63 = vadd.f32 %v526_v34, %v513_v42  ;;  %v525_v9 = vadd.f32 %v524_v61, %v523_v49  ;;  %v1085_v42 = vld [vmem:[#allocation15 + $0x60] sm:$0xff] }
 0x3e1   :  { %1096 = vmatpush.msra.mxu2 %v1085_v42  ;;  %v1081_v34 = vld [vmem:[#allocation15 + $0x40] sm:$0xff] }
 0x3e2   :  { %v528_v48 = vrot.slane %v527_v63, 2 }
 0x3e3   :  { %v495_v39 = vpop.permute.xlu1 %494  ;;  %1097 = vmatpush.msra.mxu2 %v1084_v51 }
 0x3e4   :  { %v529_v14 = vadd.f32 %v528_v48, %v527_v63  ;;  %v516_v58 = vmul.f32 %v1202_v55, %v495_v39  ;;  %v1077_v63 = vld [vmem:[#allocation15 + $0x20] sm:$0xff]  ;;  %v1074_v39 = vld [vmem:[#allocation15 + $0x8] sm:$0xff] }
 0x3e5   :  { %1098 = vmatpush.msra.mxu2 %v1083_v43 }
 0x3e6   :  { %v530_v18 = vrot.slane %v529_v14, 1  ;;  %v544_v62 = vrot.slane %v516_v58, 4 }
 0x3e7   :  { %1099 = vmatpush.msra.mxu2 %v1082_v8 }
 0x3e8   :  { %v531_v3 = vadd.f32 %v530_v18, %v529_v14  ;;  %v545_v21 = vadd.f32 %v544_v62, %v516_v58  ;;  %v1073_v14 = vld [vmem:[#allocation15] sm:$0xff]  ;;  %v1157_v62 = vld [vmem:[%s1843_s9] ss:$0 sm:$0xff] }
 0x3e9   :  { %1100 = vmatpush.msra.mxu2 %v1081_v34 }
 0x3ea   :  { %v546_v16 = vrot.slane %v545_v21, 2  ;;  %v979_v25 = vsel %vm335_vm0, %v531_v3, %v525_v9 }
 0x3eb   :  { %v510_v22 = vpop.permute.xlu1 %509  ;;  %v980_v31 = vsel %vm337_vm1, %v537_v53, %v979_v25  ;;  %1101 = vmatpush.msra.mxu2 %v1080_v32 }
 0x3ec   :  { %v547_v7 = vadd.f32 %v546_v16, %v545_v21  ;;  %v519_v46 = vmul.f32 %v1203_v36, %v510_v22  ;;  %v981_v4 = vsel %vm339_vm2, %v543_v38, %v980_v31 }
 0x3ed   :  { %1102 = vmatpush.msra.mxu2 %v1079_v45 }
 0x3ee   :  { %v548_v24 = vrot.slane %v547_v7, 1  ;;  %v562_v28 = vrot.slane %v519_v46, 4 }
 0x3ef   :  { %1103 = vmatpush.msra.mxu2 %v1078_v11 }
 0x3f0   :  { %v549_v12 = vadd.f32 %v548_v24, %v547_v7  ;;  %v563_v56 = vadd.f32 %v562_v28, %v519_v46 }
 0x3f1   :  { %1104 = vmatpush.msra.mxu2 %v1077_v63 }
 0x3f2   :  { %v564_v23 = vrot.slane %v563_v56, 2  ;;  %v982_v57 = vsel %vm341_vm3, %v549_v12, %v981_v4 }
 0x3f3   :  { %v983_v19 = vsel %vm343_vm4, %v555_v20, %v982_v57  ;;  %1105 = vmatpush.msra.mxu2 %v1076_v44 }
 0x3f4   :  { %v565_v37 = vadd.f32 %v564_v23, %v563_v56  ;;  %v984_v40 = vsel %vm345_vm5, %v561_v59, %v983_v19 }
 0x3f5   :  { %1106 = vmatpush.msra.mxu2 %v1075_v10 }
 0x3f6   :  { %v566_v2 = vrot.slane %v565_v37, 1 }
 0x3f7   :  { %1107 = vmatpush.msra.mxu2 %v1074_v39 }
 0x3f8   :  { %v567_v15 = vadd.f32 %v566_v2, %v565_v37 }
 0x3f9   :  { %1108 = vmatpush.msra.mxu2 %v1073_v14 }
 0x3fa   :  { %v985_v27 = vsel %vm347_vm6, %v567_v15, %v984_v40 }
 0x3fb   :  { %1003 = vmatmul.f32.vlgmr.msra.gmra.mxu0 %v985_v27 }
 0x458   :  { %v1060_v49 = vpop.f32.mrf.mxu1 }
 0x459   :  { %v1061_v48 = vadd.f32 %v1156_v47, %v1060_v49 }
 0x45b   :  { %v1063_v50 = vmul.f32 %v1061_v48, %v1061_v48 }
 0x45d   :  { %v1064_v52 = vmul.f32 %v1063_v50, %v1061_v48 }
 0x45f   :  { %v1065_v55 = vmul.f32 0.044715, %v1064_v52 }
 0x461   :  { %v1066_v58 = vadd.f32 %v1065_v55, %v1061_v48 }
 0x463   :  { %v1067_v60 = vmul.f32 0.7978846, %v1066_v58 }
 0x465   :  { %1195 = vtanh.f32 %v1067_v60 }
 0x46b   :  { %v1196_v61 = vpop.eup %1195 }
 0x46c   :  { %v1069_v18 = vadd.f32 1.0, %v1196_v61 }
 0x46e   :  { %v1070_v0 = vmul.f32 0.5, %v1069_v18 }
 0x470   :  { %v1071_v3 = vmul.f32 %v1070_v0, %v1061_v48 }
 0x478   :  { %v1004_v26 = vpop.f32.mrf.mxu0 }
 0x479   :  { %v1005_v1 = vadd.f32 %v1157_v62, %v1004_v26 }
 0x47b   :  { %v1072_v21 = vmul.f32 %v1071_v3, %v1005_v1 }
 0x47d   :  { %1109 = vmatmul.f32.vlgmr.msra.gmra.mxu2 %v1072_v21 }
 0x500   :  { %v1110_v9 = vpop.f32.mrf.mxu2 }
 0x501   :  { %v1111_v16 = vadd.f32 %v1158_v5, %v1110_v9 }
 0x503   :  { %1113 = vst [vmem:[#allocation16] sm:$0xff] %v1111_v16 }
 0x504   :  { %1124 = dma.vmem_to_hbm [thread:$0]  %s1120_s17, 128, %s1122_s20, [#allocation6]  }
 0x505   :  { %1404 = dma.done.wait [#allocation6], 128  }
 0x506   :  { %1405 = vsyncadd [#allocation6], 4294967168 }
 0x507   :  { %1129 = vsyncpa [#allocation5], 1 }
 0x508   :  { %1130 = vsyncpa [#allocation8], 1 }
 0x509   :  { %1131 = vsyncpa [#allocation11], 1 }
 0x50a   :  { %1132 = vsyncpa [#allocation14], 1 }
 0x50b   :  { %1133 = vsyncpa [#allocation6], 1 }

</bundles_post_ra>
